<compile_context>
chip_gen: v5e
topology: v5e:2x2
jax: 0.10.0
libtpu: 0.0.40
codegen_flags: <defaults>
</compile_context>

<pallas_src>
import jax
import jax.numpy as jnp
from jax.experimental import pallas as pl
from jax.experimental.pallas import tpu as pltpu

EPS = 1e-5
MXU_DTYPE = jnp.bfloat16  # MXU operand dtype; accumulation stays float32


def _vmem_spec():
    return pl.BlockSpec(memory_space=pltpu.MemorySpace.VMEM)


def _bn_relu_2seg(h, gamma, beta):
    """BatchNorm1d (training mode, biased variance) + ReLU, with batch statistics
    computed independently for the two consecutive B-row segments of `h`
    (one segment per original encoder / decoder call).  Fully vectorized:
    one leading-dim reshape, sublane-axis reductions, no Python per-segment loop."""
    rows, H = h.shape
    B = rows // 2
    h3 = h.reshape(2, B, H)
    mu = jnp.mean(h3, axis=1, keepdims=True)          # (2, 1, H)
    cen = h3 - mu
    var = jnp.mean(cen * cen, axis=1, keepdims=True)  # two-pass biased variance
    y = cen * jax.lax.rsqrt(var + EPS) * gamma + beta
    return jnp.maximum(y, 0.0).reshape(rows, H)


# ---------------- Fused Pallas kernel ----------------

def tde_kernel(x_ref,
               ew1_ref, eg1_ref, ebe1_ref,
               ew2_ref, eg2_ref, ebe2_ref,
               ewti_ref, ebti_ref, ewtv_ref, ebtv_ref,
               dw1ti_ref, dw1tv_ref, dg1_ref, dbe1_ref,
               dw2_ref, dg2_ref, dbe2_ref,
               dw3_ref, db3_ref,
               slab_ref, loss_ref):
    rows, T = x_ref.shape            # rows = 2B  (x1 stacked on x2)
    B = rows // 2
    L = ewti_ref.shape[1]
    P = slab_ref.shape[1]

    x = x_ref[...]                                               # (2B, T) f32

    # ---------- encoder: both transitions share every MXU matmul ----------
    h = jnp.dot(x.astype(MXU_DTYPE), ew1_ref[...],
                preferred_element_type=jnp.float32)              # (2B, H)
    h = _bn_relu_2seg(h, eg1_ref[...], ebe1_ref[...])
    h = jnp.dot(h.astype(MXU_DTYPE), ew2_ref[...],
                preferred_element_type=jnp.float32)
    h = _bn_relu_2seg(h, eg2_ref[...], ebe2_ref[...])
    hb = h.astype(MXU_DTYPE)
    ti = jnp.dot(hb, ewti_ref[...], preferred_element_type=jnp.float32) + ebti_ref[...]
    tv = jnp.dot(hb, ewtv_ref[...], preferred_element_type=jnp.float32) + ebtv_ref[...]

    # ---------- decoder: two independent (2B, H) streams, no row concat ----------
    #   stream a: decoder(ti, tv) -> reconstructed_transitions_{1,2}
    #   stream b: decoder(ti, 0)  -> time_invariant_transitions_{1,2}
    # cat([ti, tv]) @ W1 == ti @ W1[:L] + tv @ W1[L:]; stream b reuses the ti part.
    ti_part = jnp.dot(ti.astype(MXU_DTYPE), dw1ti_ref[...],
                      preferred_element_type=jnp.float32)        # (2B, H)
    tv_part = jnp.dot(tv.astype(MXU_DTYPE), dw1tv_ref[...],
                      preferred_element_type=jnp.float32)        # (2B, H)

    dg1, dbe1 = dg1_ref[...], dbe1_ref[...]
    dg2, dbe2 = dg2_ref[...], dbe2_ref[...]
    dw2, dw3, db3 = dw2_ref[...], dw3_ref[...], db3_ref[...]

    def decode_tail(h0):
        hd = _bn_relu_2seg(h0, dg1, dbe1)
        hd = jnp.dot(hd.astype(MXU_DTYPE), dw2, preferred_element_type=jnp.float32)
        hd = _bn_relu_2seg(hd, dg2, dbe2)
        return jnp.dot(hd.astype(MXU_DTYPE), dw3,
                       preferred_element_type=jnp.float32) + db3

    rec = decode_tail(ti_part + tv_part)   # (2B, T)  rec1 | rec2
    tit = decode_tail(ti_part)             # (2B, T)  tt1  | tt2

    # ---------- losses: folded pairs, reduced in-kernel to SMEM scalars ----------
    d_rec = tit - x
    d_ae = rec - x
    d_sim = tit[:B, :] - tit[B:, :]
    loss_ref[0] = 2.0 * jnp.mean(d_rec * d_rec)   # reconstruction_loss
    loss_ref[1] = 2.0 * jnp.mean(d_ae * d_ae)     # ae_loss
    loss_ref[2] = jnp.mean(d_sim * d_sim)         # similarity_loss

    # ---------- single lane-dense output slab (last dim = multiple of 128) ----------
    pieces = [rec, tit, ti, tv]
    pad_w = P - (2 * T + 2 * L)
    if pad_w:
        pieces.append(jnp.zeros((rows, pad_w), jnp.float32))
    slab_ref[...] = jnp.concatenate(pieces, axis=1)


# ---------------- Wrapper ----------------

def tde_forward(transitions_1, transitions_2, enc_p, dec_p):
    B, T = transitions_1.shape
    L = enc_p["wti"].shape[1]
    H = enc_p["w1"].shape[1]

    # Pre-stack the two transitions (XLA glue, no in-kernel concat).
    x = jnp.concatenate([transitions_1, transitions_2], axis=0).astype(jnp.float32)

    def mx(w):  # cast MXU weight operands once, outside the kernel
        return w.astype(MXU_DTYPE)

    # Pre-split decoder W1 (avoids in-kernel sublane slicing of the weight).
    dw1_ti = mx(dec_p["w1"][:L, :])
    dw1_tv = mx(dec_p["w1"][L:, :])

    # Lane-dense packed output width (multiple of 128): [rec | tit | ti | tv | pad].
    P = ((2 * T + 2 * L + 127) // 128) * 128

    args = (x,
            mx(enc_p["w1"]), enc_p["g1"], enc_p["be1"],
            mx(enc_p["w2"]), enc_p["g2"], enc_p["be2"],
            mx(enc_p["wti"]), enc_p["bti"], mx(enc_p["wtv"]), enc_p["btv"],
            dw1_ti, dw1_tv, dec_p["g1"], dec_p["be1"],
            mx(dec_p["w2"]), dec_p["g2"], dec_p["be2"],
            mx(dec_p["w3"]), dec_p["b3"])

    flops = 2 * 2 * B * (T * H + H * H + 2 * H * L          # encoder
                         + 2 * L * H + 2 * H * H + 2 * H * T)  # decoder (2 streams)
    transcendentals = 6 * 2 * H                               # rsqrt per BN segment
    bytes_accessed = (sum(int(a.size) * a.dtype.itemsize for a in args)
                      + 2 * B * P * 4 + 3 * 4)

    slab, losses = pl.pallas_call(
        tde_kernel,
        out_shape=(jax.ShapeDtypeStruct((2 * B, P), jnp.float32),
                   jax.ShapeDtypeStruct((3,), jnp.float32)),
        in_specs=[_vmem_spec()] * len(args),
        out_specs=(_vmem_spec(),
                   pl.BlockSpec(memory_space=pltpu.MemorySpace.SMEM)),
        cost_estimate=pl.CostEstimate(flops=int(flops),
                                      transcendentals=int(transcendentals),
                                      bytes_accessed=int(bytes_accessed)),
    )(*args)

    rec = slab[:, 0:T]
    tit = slab[:, T:2 * T]
    ti = slab[:, 2 * T:2 * T + L]
    tv = slab[:, 2 * T + L:2 * T + 2 * L]

    return dict(
        reconstruction_loss=losses[0],
        ae_loss=losses[1],
        similarity_loss=losses[2],
        time_invariant_latent_1=ti[:B],
        time_variant_latent_1=tv[:B],
        time_invariant_latent_2=ti[B:],
        time_variant_latent_2=tv[B:],
        reconstructed_transitions_1=rec[:B],
        reconstructed_transitions_2=rec[B:],
        time_invariant_transitions_1=tit[:B],
        time_invariant_transitions_2=tit[B:],
    )


# ---------------- Parameter setup (glue, plain JAX) ----------------

def _spectral_normalize(key, w, iters=50):
    # w: (out_features, in_features). Divide by largest singular value
    # (converged power iteration — spectral_norm's forward semantics).
    u = jax.random.normal(key, (w.shape[0],), jnp.float32)
    u = u / (jnp.linalg.norm(u) + 1e-12)
    for _ in range(iters):
        v = w.T @ u
        v = v / (jnp.linalg.norm(v) + 1e-12)
        u = w @ v
        u = u / (jnp.linalg.norm(u) + 1e-12)
    sigma = u @ (w @ v)
    return w / sigma


def _init_linear_sn(key, fan_in, fan_out):
    kw, kb, ku = jax.random.split(key, 3)
    bound = 1.0 / (fan_in ** 0.5)
    w = jax.random.uniform(kw, (fan_out, fan_in), jnp.float32, -bound, bound)
    b = jax.random.uniform(kb, (1, fan_out), jnp.float32, -bound, bound)
    w = _spectral_normalize(ku, w)
    return jnp.asarray(w.T), b  # (in, out), (1, out)


def init_tde_params(key, transition_size, latent_dim, hidden_dim):
    keys = jax.random.split(key, 8)
    ones = jnp.ones((1, hidden_dim), jnp.float32)
    zeros = jnp.zeros((1, hidden_dim), jnp.float32)

    # Encoder (biases of layers feeding BatchNorm are dropped: they cancel exactly).
    w1, _ = _init_linear_sn(keys[0], transition_size, hidden_dim)
    w2, _ = _init_linear_sn(keys[1], hidden_dim, hidden_dim)
    wti, bti = _init_linear_sn(keys[2], hidden_dim, latent_dim)
    wtv, btv = _init_linear_sn(keys[3], hidden_dim, latent_dim)
    enc = dict(w1=w1, g1=ones, be1=zeros,
               w2=w2, g2=ones, be2=zeros,
               wti=wti, bti=bti, wtv=wtv, btv=btv)

    # Decoder
    dw1, _ = _init_linear_sn(keys[4], latent_dim * 2, hidden_dim)
    dw2, _ = _init_linear_sn(keys[5], hidden_dim, hidden_dim)
    dw3, db3 = _init_linear_sn(keys[6], hidden_dim, transition_size)
    dec = dict(w1=dw1, g1=ones, be1=zeros,
               w2=dw2, g2=ones, be2=zeros,
               w3=dw3, b3=db3)
    return enc, dec


if __name__ == "__main__":
    B, T, L, H = 8, 16, 8, 32  # batch, transition_size, latent_dim, hidden_dim

    key = jax.random.PRNGKey(0)
    k_params, k_x1, k_x2 = jax.random.split(key, 3)

    enc_p, dec_p = init_tde_params(k_params, T, L, H)
    transitions_1 = jax.random.normal(k_x1, (B, T), jnp.float32)
    transitions_2 = jax.random.normal(k_x2, (B, T), jnp.float32)

    out = jax.jit(tde_forward)(transitions_1, transitions_2, enc_p, dec_p)
    out = jax.block_until_ready(out)

    # basic sanity on shapes / values
    assert out["time_invariant_latent_1"].shape == (B, L)
    assert out["time_variant_latent_2"].shape == (B, L)
    assert out["reconstructed_transitions_1"].shape == (B, T)
    assert out["time_invariant_transitions_2"].shape == (B, T)
    assert out["reconstruction_loss"].shape == ()
    assert bool(jnp.isfinite(out["reconstruction_loss"]))
    assert bool(jnp.isfinite(out["ae_loss"]))
    assert bool(jnp.isfinite(out["similarity_loss"]))

    print("KERNEL_OK")
</pallas_src>

<mosaic_0001>
module attributes {stable_mosaic.version = 11 : i64} {
  func.func @tde_kernel(%arg0: memref<16x16xf32, #tpu.memory_space<vmem>>, %arg1: memref<16x32xbf16, #tpu.memory_space<vmem>>, %arg2: memref<1x32xf32, #tpu.memory_space<vmem>>, %arg3: memref<1x32xf32, #tpu.memory_space<vmem>>, %arg4: memref<32x32xbf16, #tpu.memory_space<vmem>>, %arg5: memref<1x32xf32, #tpu.memory_space<vmem>>, %arg6: memref<1x32xf32, #tpu.memory_space<vmem>>, %arg7: memref<32x8xbf16, #tpu.memory_space<vmem>>, %arg8: memref<1x8xf32, #tpu.memory_space<vmem>>, %arg9: memref<32x8xbf16, #tpu.memory_space<vmem>>, %arg10: memref<1x8xf32, #tpu.memory_space<vmem>>, %arg11: memref<8x32xbf16, #tpu.memory_space<vmem>>, %arg12: memref<8x32xbf16, #tpu.memory_space<vmem>>, %arg13: memref<1x32xf32, #tpu.memory_space<vmem>>, %arg14: memref<1x32xf32, #tpu.memory_space<vmem>>, %arg15: memref<32x32xbf16, #tpu.memory_space<vmem>>, %arg16: memref<1x32xf32, #tpu.memory_space<vmem>>, %arg17: memref<1x32xf32, #tpu.memory_space<vmem>>, %arg18: memref<32x16xbf16, #tpu.memory_space<vmem>>, %arg19: memref<1x16xf32, #tpu.memory_space<vmem>>, %arg20: memref<16x128xf32, #tpu.memory_space<vmem>>, %arg21: memref<3xf32, #tpu.memory_space<smem>>) attributes {dimension_semantics = [], scalar_prefetch = 0 : i64, scratch_operands = 0 : i64, tpu.core_type = #tpu.core_type<tc>} {
    %c0 = arith.constant 0 : index
    %c0_0 = arith.constant 0 : index
    %0 = vector.load %arg0[%c0, %c0_0] : memref<16x16xf32, #tpu.memory_space<vmem>>, vector<16x16xf32>
    %1 = arith.truncf %0 : vector<16x16xf32> to vector<16x16xbf16>
    %c0_1 = arith.constant 0 : index
    %c0_2 = arith.constant 0 : index
    %2 = vector.load %arg1[%c0_1, %c0_2] : memref<16x32xbf16, #tpu.memory_space<vmem>>, vector<16x32xbf16>
    %cst = arith.constant dense<0.000000e+00> : vector<16x32xf32>
    %3 = tpu.matmul %1, %2, %cst {dimension_numbers = #tpu.dot_dimension_numbers<[1], [0], [0], [1], [0, 0, 1, 1], [], []>} : vector<16x16xbf16>, vector<16x32xbf16>, vector<16x32xf32> -> vector<16x32xf32>
    %c0_3 = arith.constant 0 : index
    %c0_4 = arith.constant 0 : index
    %4 = vector.load %arg2[%c0_3, %c0_4] : memref<1x32xf32, #tpu.memory_space<vmem>>, vector<1x32xf32>
    %c0_5 = arith.constant 0 : index
    %c0_6 = arith.constant 0 : index
    %5 = vector.load %arg3[%c0_5, %c0_6] : memref<1x32xf32, #tpu.memory_space<vmem>>, vector<1x32xf32>
    %6 = vector.shape_cast %3 : vector<16x32xf32> to vector<2x8x32xf32>
    %cst_7 = arith.constant dense<0.000000e+00> : vector<2x32xf32>
    %7 = vector.multi_reduction <add>, %6, %cst_7 [1] : vector<2x8x32xf32> to vector<2x32xf32>
    %8 = vector.shape_cast %7 : vector<2x32xf32> to vector<2x1x32xf32>
    %cst_8 = arith.constant 8.000000e+00 : f32
    %9 = vector.broadcast %cst_8 : f32 to vector<2x1x32xf32>
    %10 = arith.divf %8, %9 : vector<2x1x32xf32>
    %11 = vector.broadcast %10 : vector<2x1x32xf32> to vector<2x8x32xf32>
    %12 = arith.subf %6, %11 : vector<2x8x32xf32>
    %13 = arith.mulf %12, %12 : vector<2x8x32xf32>
    %cst_9 = arith.constant dense<0.000000e+00> : vector<2x32xf32>
    %14 = vector.multi_reduction <add>, %13, %cst_9 [1] : vector<2x8x32xf32> to vector<2x32xf32>
    %15 = vector.shape_cast %14 : vector<2x32xf32> to vector<2x1x32xf32>
    %cst_10 = arith.constant 8.000000e+00 : f32
    %16 = vector.broadcast %cst_10 : f32 to vector<2x1x32xf32>
    %17 = arith.divf %15, %16 : vector<2x1x32xf32>
    %cst_11 = arith.constant 9.99999974E-6 : f32
    %18 = vector.broadcast %cst_11 : f32 to vector<2x1x32xf32>
    %19 = arith.addf %17, %18 : vector<2x1x32xf32>
    %20 = math.rsqrt %19 : vector<2x1x32xf32>
    %21 = vector.broadcast %20 : vector<2x1x32xf32> to vector<2x8x32xf32>
    %22 = arith.mulf %12, %21 : vector<2x8x32xf32>
    %23 = vector.shape_cast %4 : vector<1x32xf32> to vector<1x1x32xf32>
    %24 = vector.broadcast %23 : vector<1x1x32xf32> to vector<2x8x32xf32>
    %25 = arith.mulf %22, %24 : vector<2x8x32xf32>
    %26 = vector.shape_cast %5 : vector<1x32xf32> to vector<1x1x32xf32>
    %27 = vector.broadcast %26 : vector<1x1x32xf32> to vector<2x8x32xf32>
    %28 = arith.addf %25, %27 : vector<2x8x32xf32>
    %cst_12 = arith.constant 0.000000e+00 : f32
    %29 = vector.broadcast %cst_12 : f32 to vector<2x8x32xf32>
    %30 = arith.maximumf %28, %29 : vector<2x8x32xf32>
    %31 = vector.shape_cast %30 : vector<2x8x32xf32> to vector<16x32xf32>
    %32 = arith.truncf %31 : vector<16x32xf32> to vector<16x32xbf16>
    %c0_13 = arith.constant 0 : index
    %c0_14 = arith.constant 0 : index
    %33 = vector.load %arg4[%c0_13, %c0_14] : memref<32x32xbf16, #tpu.memory_space<vmem>>, vector<32x32xbf16>
    %cst_15 = arith.constant dense<0.000000e+00> : vector<16x32xf32>
    %34 = tpu.matmul %32, %33, %cst_15 {dimension_numbers = #tpu.dot_dimension_numbers<[1], [0], [0], [1], [0, 0, 1, 1], [], []>} : vector<16x32xbf16>, vector<32x32xbf16>, vector<16x32xf32> -> vector<16x32xf32>
    %c0_16 = arith.constant 0 : index
    %c0_17 = arith.constant 0 : index
    %35 = vector.load %arg5[%c0_16, %c0_17] : memref<1x32xf32, #tpu.memory_space<vmem>>, vector<1x32xf32>
    %c0_18 = arith.constant 0 : index
    %c0_19 = arith.constant 0 : index
    %36 = vector.load %arg6[%c0_18, %c0_19] : memref<1x32xf32, #tpu.memory_space<vmem>>, vector<1x32xf32>
    %37 = vector.shape_cast %34 : vector<16x32xf32> to vector<2x8x32xf32>
    %cst_20 = arith.constant dense<0.000000e+00> : vector<2x32xf32>
    %38 = vector.multi_reduction <add>, %37, %cst_20 [1] : vector<2x8x32xf32> to vector<2x32xf32>
    %39 = vector.shape_cast %38 : vector<2x32xf32> to vector<2x1x32xf32>
    %cst_21 = arith.constant 8.000000e+00 : f32
    %40 = vector.broadcast %cst_21 : f32 to vector<2x1x32xf32>
    %41 = arith.divf %39, %40 : vector<2x1x32xf32>
    %42 = vector.broadcast %41 : vector<2x1x32xf32> to vector<2x8x32xf32>
    %43 = arith.subf %37, %42 : vector<2x8x32xf32>
    %44 = arith.mulf %43, %43 : vector<2x8x32xf32>
    %cst_22 = arith.constant dense<0.000000e+00> : vector<2x32xf32>
    %45 = vector.multi_reduction <add>, %44, %cst_22 [1] : vector<2x8x32xf32> to vector<2x32xf32>
    %46 = vector.shape_cast %45 : vector<2x32xf32> to vector<2x1x32xf32>
    %cst_23 = arith.constant 8.000000e+00 : f32
    %47 = vector.broadcast %cst_23 : f32 to vector<2x1x32xf32>
    %48 = arith.divf %46, %47 : vector<2x1x32xf32>
    %cst_24 = arith.constant 9.99999974E-6 : f32
    %49 = vector.broadcast %cst_24 : f32 to vector<2x1x32xf32>
    %50 = arith.addf %48, %49 : vector<2x1x32xf32>
    %51 = math.rsqrt %50 : vector<2x1x32xf32>
    %52 = vector.broadcast %51 : vector<2x1x32xf32> to vector<2x8x32xf32>
    %53 = arith.mulf %43, %52 : vector<2x8x32xf32>
    %54 = vector.shape_cast %35 : vector<1x32xf32> to vector<1x1x32xf32>
    %55 = vector.broadcast %54 : vector<1x1x32xf32> to vector<2x8x32xf32>
    %56 = arith.mulf %53, %55 : vector<2x8x32xf32>
    %57 = vector.shape_cast %36 : vector<1x32xf32> to vector<1x1x32xf32>
    %58 = vector.broadcast %57 : vector<1x1x32xf32> to vector<2x8x32xf32>
    %59 = arith.addf %56, %58 : vector<2x8x32xf32>
    %cst_25 = arith.constant 0.000000e+00 : f32
    %60 = vector.broadcast %cst_25 : f32 to vector<2x8x32xf32>
    %61 = arith.maximumf %59, %60 : vector<2x8x32xf32>
    %62 = vector.shape_cast %61 : vector<2x8x32xf32> to vector<16x32xf32>
    %63 = arith.truncf %62 : vector<16x32xf32> to vector<16x32xbf16>
    %c0_26 = arith.constant 0 : index
    %c0_27 = arith.constant 0 : index
    %64 = vector.load %arg7[%c0_26, %c0_27] : memref<32x8xbf16, #tpu.memory_space<vmem>>, vector<32x8xbf16>
    %cst_28 = arith.constant dense<0.000000e+00> : vector<16x8xf32>
    %65 = tpu.matmul %63, %64, %cst_28 {dimension_numbers = #tpu.dot_dimension_numbers<[1], [0], [0], [1], [0, 0, 1, 1], [], []>} : vector<16x32xbf16>, vector<32x8xbf16>, vector<16x8xf32> -> vector<16x8xf32>
    %c0_29 = arith.constant 0 : index
    %c0_30 = arith.constant 0 : index
    %66 = vector.load %arg8[%c0_29, %c0_30] : memref<1x8xf32, #tpu.memory_space<vmem>>, vector<1x8xf32>
    %67 = vector.broadcast %66 : vector<1x8xf32> to vector<16x8xf32>
    %68 = arith.addf %65, %67 : vector<16x8xf32>
    %c0_31 = arith.constant 0 : index
    %c0_32 = arith.constant 0 : index
    %69 = vector.load %arg9[%c0_31, %c0_32] : memref<32x8xbf16, #tpu.memory_space<vmem>>, vector<32x8xbf16>
    %cst_33 = arith.constant dense<0.000000e+00> : vector<16x8xf32>
    %70 = tpu.matmul %63, %69, %cst_33 {dimension_numbers = #tpu.dot_dimension_numbers<[1], [0], [0], [1], [0, 0, 1, 1], [], []>} : vector<16x32xbf16>, vector<32x8xbf16>, vector<16x8xf32> -> vector<16x8xf32>
    %c0_34 = arith.constant 0 : index
    %c0_35 = arith.constant 0 : index
    %71 = vector.load %arg10[%c0_34, %c0_35] : memref<1x8xf32, #tpu.memory_space<vmem>>, vector<1x8xf32>
    %72 = vector.broadcast %71 : vector<1x8xf32> to vector<16x8xf32>
    %73 = arith.addf %70, %72 : vector<16x8xf32>
    %74 = arith.truncf %68 : vector<16x8xf32> to vector<16x8xbf16>
    %c0_36 = arith.constant 0 : index
    %c0_37 = arith.constant 0 : index
    %75 = vector.load %arg11[%c0_36, %c0_37] : memref<8x32xbf16, #tpu.memory_space<vmem>>, vector<8x32xbf16>
    %cst_38 = arith.constant dense<0.000000e+00> : vector<16x32xf32>
    %76 = tpu.matmul %74, %75, %cst_38 {dimension_numbers = #tpu.dot_dimension_numbers<[1], [0], [0], [1], [0, 0, 1, 1], [], []>} : vector<16x8xbf16>, vector<8x32xbf16>, vector<16x32xf32> -> vector<16x32xf32>
    %77 = arith.truncf %73 : vector<16x8xf32> to vector<16x8xbf16>
    %c0_39 = arith.constant 0 : index
    %c0_40 = arith.constant 0 : index
    %78 = vector.load %arg12[%c0_39, %c0_40] : memref<8x32xbf16, #tpu.memory_space<vmem>>, vector<8x32xbf16>
    %cst_41 = arith.constant dense<0.000000e+00> : vector<16x32xf32>
    %79 = tpu.matmul %77, %78, %cst_41 {dimension_numbers = #tpu.dot_dimension_numbers<[1], [0], [0], [1], [0, 0, 1, 1], [], []>} : vector<16x8xbf16>, vector<8x32xbf16>, vector<16x32xf32> -> vector<16x32xf32>
    %c0_42 = arith.constant 0 : index
    %c0_43 = arith.constant 0 : index
    %80 = vector.load %arg13[%c0_42, %c0_43] : memref<1x32xf32, #tpu.memory_space<vmem>>, vector<1x32xf32>
    %c0_44 = arith.constant 0 : index
    %c0_45 = arith.constant 0 : index
    %81 = vector.load %arg14[%c0_44, %c0_45] : memref<1x32xf32, #tpu.memory_space<vmem>>, vector<1x32xf32>
    %c0_46 = arith.constant 0 : index
    %c0_47 = arith.constant 0 : index
    %82 = vector.load %arg16[%c0_46, %c0_47] : memref<1x32xf32, #tpu.memory_space<vmem>>, vector<1x32xf32>
    %c0_48 = arith.constant 0 : index
    %c0_49 = arith.constant 0 : index
    %83 = vector.load %arg17[%c0_48, %c0_49] : memref<1x32xf32, #tpu.memory_space<vmem>>, vector<1x32xf32>
    %c0_50 = arith.constant 0 : index
    %c0_51 = arith.constant 0 : index
    %84 = vector.load %arg15[%c0_50, %c0_51] : memref<32x32xbf16, #tpu.memory_space<vmem>>, vector<32x32xbf16>
    %c0_52 = arith.constant 0 : index
    %c0_53 = arith.constant 0 : index
    %85 = vector.load %arg18[%c0_52, %c0_53] : memref<32x16xbf16, #tpu.memory_space<vmem>>, vector<32x16xbf16>
    %c0_54 = arith.constant 0 : index
    %c0_55 = arith.constant 0 : index
    %86 = vector.load %arg19[%c0_54, %c0_55] : memref<1x16xf32, #tpu.memory_space<vmem>>, vector<1x16xf32>
    %87 = arith.addf %76, %79 : vector<16x32xf32>
    %88 = vector.shape_cast %87 : vector<16x32xf32> to vector<2x8x32xf32>
    %cst_56 = arith.constant dense<0.000000e+00> : vector<2x32xf32>
    %89 = vector.multi_reduction <add>, %88, %cst_56 [1] : vector<2x8x32xf32> to vector<2x32xf32>
    %90 = vector.shape_cast %89 : vector<2x32xf32> to vector<2x1x32xf32>
    %cst_57 = arith.constant 8.000000e+00 : f32
    %91 = vector.broadcast %cst_57 : f32 to vector<2x1x32xf32>
    %92 = arith.divf %90, %91 : vector<2x1x32xf32>
    %93 = vector.broadcast %92 : vector<2x1x32xf32> to vector<2x8x32xf32>
    %94 = arith.subf %88, %93 : vector<2x8x32xf32>
    %95 = arith.mulf %94, %94 : vector<2x8x32xf32>
    %cst_58 = arith.constant dense<0.000000e+00> : vector<2x32xf32>
    %96 = vector.multi_reduction <add>, %95, %cst_58 [1] : vector<2x8x32xf32> to vector<2x32xf32>
    %97 = vector.shape_cast %96 : vector<2x32xf32> to vector<2x1x32xf32>
    %cst_59 = arith.constant 8.000000e+00 : f32
    %98 = vector.broadcast %cst_59 : f32 to vector<2x1x32xf32>
    %99 = arith.divf %97, %98 : vector<2x1x32xf32>
    %cst_60 = arith.constant 9.99999974E-6 : f32
    %100 = vector.broadcast %cst_60 : f32 to vector<2x1x32xf32>
    %101 = arith.addf %99, %100 : vector<2x1x32xf32>
    %102 = math.rsqrt %101 : vector<2x1x32xf32>
    %103 = vector.broadcast %102 : vector<2x1x32xf32> to vector<2x8x32xf32>
    %104 = arith.mulf %94, %103 : vector<2x8x32xf32>
    %105 = vector.shape_cast %80 : vector<1x32xf32> to vector<1x1x32xf32>
    %106 = vector.broadcast %105 : vector<1x1x32xf32> to vector<2x8x32xf32>
    %107 = arith.mulf %104, %106 : vector<2x8x32xf32>
    %108 = vector.shape_cast %81 : vector<1x32xf32> to vector<1x1x32xf32>
    %109 = vector.broadcast %108 : vector<1x1x32xf32> to vector<2x8x32xf32>
    %110 = arith.addf %107, %109 : vector<2x8x32xf32>
    %cst_61 = arith.constant 0.000000e+00 : f32
    %111 = vector.broadcast %cst_61 : f32 to vector<2x8x32xf32>
    %112 = arith.maximumf %110, %111 : vector<2x8x32xf32>
    %113 = vector.shape_cast %112 : vector<2x8x32xf32> to vector<16x32xf32>
    %114 = arith.truncf %113 : vector<16x32xf32> to vector<16x32xbf16>
    %cst_62 = arith.constant dense<0.000000e+00> : vector<16x32xf32>
    %115 = tpu.matmul %114, %84, %cst_62 {dimension_numbers = #tpu.dot_dimension_numbers<[1], [0], [0], [1], [0, 0, 1, 1], [], []>} : vector<16x32xbf16>, vector<32x32xbf16>, vector<16x32xf32> -> vector<16x32xf32>
    %116 = vector.shape_cast %115 : vector<16x32xf32> to vector<2x8x32xf32>
    %cst_63 = arith.constant dense<0.000000e+00> : vector<2x32xf32>
    %117 = vector.multi_reduction <add>, %116, %cst_63 [1] : vector<2x8x32xf32> to vector<2x32xf32>
    %118 = vector.shape_cast %117 : vector<2x32xf32> to vector<2x1x32xf32>
    %cst_64 = arith.constant 8.000000e+00 : f32
    %119 = vector.broadcast %cst_64 : f32 to vector<2x1x32xf32>
    %120 = arith.divf %118, %119 : vector<2x1x32xf32>
    %121 = vector.broadcast %120 : vector<2x1x32xf32> to vector<2x8x32xf32>
    %122 = arith.subf %116, %121 : vector<2x8x32xf32>
    %123 = arith.mulf %122, %122 : vector<2x8x32xf32>
    %cst_65 = arith.constant dense<0.000000e+00> : vector<2x32xf32>
    %124 = vector.multi_reduction <add>, %123, %cst_65 [1] : vector<2x8x32xf32> to vector<2x32xf32>
    %125 = vector.shape_cast %124 : vector<2x32xf32> to vector<2x1x32xf32>
    %cst_66 = arith.constant 8.000000e+00 : f32
    %126 = vector.broadcast %cst_66 : f32 to vector<2x1x32xf32>
    %127 = arith.divf %125, %126 : vector<2x1x32xf32>
    %cst_67 = arith.constant 9.99999974E-6 : f32
    %128 = vector.broadcast %cst_67 : f32 to vector<2x1x32xf32>
    %129 = arith.addf %127, %128 : vector<2x1x32xf32>
    %130 = math.rsqrt %129 : vector<2x1x32xf32>
    %131 = vector.broadcast %130 : vector<2x1x32xf32> to vector<2x8x32xf32>
    %132 = arith.mulf %122, %131 : vector<2x8x32xf32>
    %133 = vector.shape_cast %82 : vector<1x32xf32> to vector<1x1x32xf32>
    %134 = vector.broadcast %133 : vector<1x1x32xf32> to vector<2x8x32xf32>
    %135 = arith.mulf %132, %134 : vector<2x8x32xf32>
    %136 = vector.shape_cast %83 : vector<1x32xf32> to vector<1x1x32xf32>
    %137 = vector.broadcast %136 : vector<1x1x32xf32> to vector<2x8x32xf32>
    %138 = arith.addf %135, %137 : vector<2x8x32xf32>
    %cst_68 = arith.constant 0.000000e+00 : f32
    %139 = vector.broadcast %cst_68 : f32 to vector<2x8x32xf32>
    %140 = arith.maximumf %138, %139 : vector<2x8x32xf32>
    %141 = vector.shape_cast %140 : vector<2x8x32xf32> to vector<16x32xf32>
    %142 = arith.truncf %141 : vector<16x32xf32> to vector<16x32xbf16>
    %cst_69 = arith.constant dense<0.000000e+00> : vector<16x16xf32>
    %143 = tpu.matmul %142, %85, %cst_69 {dimension_numbers = #tpu.dot_dimension_numbers<[1], [0], [0], [1], [0, 0, 1, 1], [], []>} : vector<16x32xbf16>, vector<32x16xbf16>, vector<16x16xf32> -> vector<16x16xf32>
    %144 = vector.broadcast %86 : vector<1x16xf32> to vector<16x16xf32>
    %145 = arith.addf %143, %144 : vector<16x16xf32>
    %146 = vector.shape_cast %76 : vector<16x32xf32> to vector<2x8x32xf32>
    %cst_70 = arith.constant dense<0.000000e+00> : vector<2x32xf32>
    %147 = vector.multi_reduction <add>, %146, %cst_70 [1] : vector<2x8x32xf32> to vector<2x32xf32>
    %148 = vector.shape_cast %147 : vector<2x32xf32> to vector<2x1x32xf32>
    %cst_71 = arith.constant 8.000000e+00 : f32
    %149 = vector.broadcast %cst_71 : f32 to vector<2x1x32xf32>
    %150 = arith.divf %148, %149 : vector<2x1x32xf32>
    %151 = vector.broadcast %150 : vector<2x1x32xf32> to vector<2x8x32xf32>
    %152 = arith.subf %146, %151 : vector<2x8x32xf32>
    %153 = arith.mulf %152, %152 : vector<2x8x32xf32>
    %cst_72 = arith.constant dense<0.000000e+00> : vector<2x32xf32>
    %154 = vector.multi_reduction <add>, %153, %cst_72 [1] : vector<2x8x32xf32> to vector<2x32xf32>
    %155 = vector.shape_cast %154 : vector<2x32xf32> to vector<2x1x32xf32>
    %cst_73 = arith.constant 8.000000e+00 : f32
    %156 = vector.broadcast %cst_73 : f32 to vector<2x1x32xf32>
    %157 = arith.divf %155, %156 : vector<2x1x32xf32>
    %cst_74 = arith.constant 9.99999974E-6 : f32
    %158 = vector.broadcast %cst_74 : f32 to vector<2x1x32xf32>
    %159 = arith.addf %157, %158 : vector<2x1x32xf32>
    %160 = math.rsqrt %159 : vector<2x1x32xf32>
    %161 = vector.broadcast %160 : vector<2x1x32xf32> to vector<2x8x32xf32>
    %162 = arith.mulf %152, %161 : vector<2x8x32xf32>
    %163 = vector.shape_cast %80 : vector<1x32xf32> to vector<1x1x32xf32>
    %164 = vector.broadcast %163 : vector<1x1x32xf32> to vector<2x8x32xf32>
    %165 = arith.mulf %162, %164 : vector<2x8x32xf32>
    %166 = vector.shape_cast %81 : vector<1x32xf32> to vector<1x1x32xf32>
    %167 = vector.broadcast %166 : vector<1x1x32xf32> to vector<2x8x32xf32>
    %168 = arith.addf %165, %167 : vector<2x8x32xf32>
    %cst_75 = arith.constant 0.000000e+00 : f32
    %169 = vector.broadcast %cst_75 : f32 to vector<2x8x32xf32>
    %170 = arith.maximumf %168, %169 : vector<2x8x32xf32>
    %171 = vector.shape_cast %170 : vector<2x8x32xf32> to vector<16x32xf32>
    %172 = arith.truncf %171 : vector<16x32xf32> to vector<16x32xbf16>
    %cst_76 = arith.constant dense<0.000000e+00> : vector<16x32xf32>
    %173 = tpu.matmul %172, %84, %cst_76 {dimension_numbers = #tpu.dot_dimension_numbers<[1], [0], [0], [1], [0, 0, 1, 1], [], []>} : vector<16x32xbf16>, vector<32x32xbf16>, vector<16x32xf32> -> vector<16x32xf32>
    %174 = vector.shape_cast %173 : vector<16x32xf32> to vector<2x8x32xf32>
    %cst_77 = arith.constant dense<0.000000e+00> : vector<2x32xf32>
    %175 = vector.multi_reduction <add>, %174, %cst_77 [1] : vector<2x8x32xf32> to vector<2x32xf32>
    %176 = vector.shape_cast %175 : vector<2x32xf32> to vector<2x1x32xf32>
    %cst_78 = arith.constant 8.000000e+00 : f32
    %177 = vector.broadcast %cst_78 : f32 to vector<2x1x32xf32>
    %178 = arith.divf %176, %177 : vector<2x1x32xf32>
    %179 = vector.broadcast %178 : vector<2x1x32xf32> to vector<2x8x32xf32>
    %180 = arith.subf %174, %179 : vector<2x8x32xf32>
    %181 = arith.mulf %180, %180 : vector<2x8x32xf32>
    %cst_79 = arith.constant dense<0.000000e+00> : vector<2x32xf32>
    %182 = vector.multi_reduction <add>, %181, %cst_79 [1] : vector<2x8x32xf32> to vector<2x32xf32>
    %183 = vector.shape_cast %182 : vector<2x32xf32> to vector<2x1x32xf32>
    %cst_80 = arith.constant 8.000000e+00 : f32
    %184 = vector.broadcast %cst_80 : f32 to vector<2x1x32xf32>
    %185 = arith.divf %183, %184 : vector<2x1x32xf32>
    %cst_81 = arith.constant 9.99999974E-6 : f32
    %186 = vector.broadcast %cst_81 : f32 to vector<2x1x32xf32>
    %187 = arith.addf %185, %186 : vector<2x1x32xf32>
    %188 = math.rsqrt %187 : vector<2x1x32xf32>
    %189 = vector.broadcast %188 : vector<2x1x32xf32> to vector<2x8x32xf32>
    %190 = arith.mulf %180, %189 : vector<2x8x32xf32>
    %191 = vector.shape_cast %82 : vector<1x32xf32> to vector<1x1x32xf32>
    %192 = vector.broadcast %191 : vector<1x1x32xf32> to vector<2x8x32xf32>
    %193 = arith.mulf %190, %192 : vector<2x8x32xf32>
    %194 = vector.shape_cast %83 : vector<1x32xf32> to vector<1x1x32xf32>
    %195 = vector.broadcast %194 : vector<1x1x32xf32> to vector<2x8x32xf32>
    %196 = arith.addf %193, %195 : vector<2x8x32xf32>
    %cst_82 = arith.constant 0.000000e+00 : f32
    %197 = vector.broadcast %cst_82 : f32 to vector<2x8x32xf32>
    %198 = arith.maximumf %196, %197 : vector<2x8x32xf32>
    %199 = vector.shape_cast %198 : vector<2x8x32xf32> to vector<16x32xf32>
    %200 = arith.truncf %199 : vector<16x32xf32> to vector<16x32xbf16>
    %cst_83 = arith.constant dense<0.000000e+00> : vector<16x16xf32>
    %201 = tpu.matmul %200, %85, %cst_83 {dimension_numbers = #tpu.dot_dimension_numbers<[1], [0], [0], [1], [0, 0, 1, 1], [], []>} : vector<16x32xbf16>, vector<32x16xbf16>, vector<16x16xf32> -> vector<16x16xf32>
    %202 = vector.broadcast %86 : vector<1x16xf32> to vector<16x16xf32>
    %203 = arith.addf %201, %202 : vector<16x16xf32>
    %204 = arith.subf %203, %0 : vector<16x16xf32>
    %205 = arith.subf %145, %0 : vector<16x16xf32>
    %206 = vector.extract_strided_slice %203 {offsets = [0, 0], sizes = [8, 16], strides = [1, 1]} : vector<16x16xf32> to vector<8x16xf32>
    %207 = vector.extract_strided_slice %203 {offsets = [8, 0], sizes = [8, 16], strides = [1, 1]} : vector<16x16xf32> to vector<8x16xf32>
    %208 = arith.subf %206, %207 : vector<8x16xf32>
    %209 = arith.mulf %204, %204 : vector<16x16xf32>
    %210 = vector.shape_cast %209 : vector<16x16xf32> to vector<1x16x16xf32>
    %cst_84 = arith.constant dense<0.000000e+00> : vector<1xf32>
    %211 = vector.multi_reduction <add>, %210, %cst_84 [1, 2] : vector<1x16x16xf32> to vector<1xf32>
    %212 = vector.shape_cast %211 : vector<1xf32> to vector<1x1x1xf32>
    %213 = vector.extract %212[0, 0, 0] : f32 from vector<1x1x1xf32>
    %cst_85 = arith.constant 2.560000e+02 : f32
    %214 = arith.divf %213, %cst_85 : f32
    %cst_86 = arith.constant 2.000000e+00 : f32
    %215 = arith.mulf %cst_86, %214 : f32
    %c0_87 = arith.constant 0 : index
    %216 = memref.load %arg21[%c0_87] : memref<3xf32, #tpu.memory_space<smem>>
    memref.store %215, %arg21[%c0_87] : memref<3xf32, #tpu.memory_space<smem>>
    %217 = arith.mulf %205, %205 : vector<16x16xf32>
    %218 = vector.shape_cast %217 : vector<16x16xf32> to vector<1x16x16xf32>
    %cst_88 = arith.constant dense<0.000000e+00> : vector<1xf32>
    %219 = vector.multi_reduction <add>, %218, %cst_88 [1, 2] : vector<1x16x16xf32> to vector<1xf32>
    %220 = vector.shape_cast %219 : vector<1xf32> to vector<1x1x1xf32>
    %221 = vector.extract %220[0, 0, 0] : f32 from vector<1x1x1xf32>
    %cst_89 = arith.constant 2.560000e+02 : f32
    %222 = arith.divf %221, %cst_89 : f32
    %cst_90 = arith.constant 2.000000e+00 : f32
    %223 = arith.mulf %cst_90, %222 : f32
    %c1 = arith.constant 1 : index
    %224 = memref.load %arg21[%c1] : memref<3xf32, #tpu.memory_space<smem>>
    memref.store %223, %arg21[%c1] : memref<3xf32, #tpu.memory_space<smem>>
    %225 = arith.mulf %208, %208 : vector<8x16xf32>
    %226 = vector.shape_cast %225 : vector<8x16xf32> to vector<1x8x16xf32>
    %cst_91 = arith.constant dense<0.000000e+00> : vector<1xf32>
    %227 = vector.multi_reduction <add>, %226, %cst_91 [1, 2] : vector<1x8x16xf32> to vector<1xf32>
    %228 = vector.shape_cast %227 : vector<1xf32> to vector<1x1x1xf32>
    %229 = vector.extract %228[0, 0, 0] : f32 from vector<1x1x1xf32>
    %cst_92 = arith.constant 1.280000e+02 : f32
    %230 = arith.divf %229, %cst_92 : f32
    %c2 = arith.constant 2 : index
    %231 = memref.load %arg21[%c2] : memref<3xf32, #tpu.memory_space<smem>>
    memref.store %230, %arg21[%c2] : memref<3xf32, #tpu.memory_space<smem>>
    %cst_93 = arith.constant 0.000000e+00 : f32
    %232 = vector.broadcast %cst_93 : f32 to vector<16x80xf32>
    %233 = tpu.concatenate %145, %203, %68, %73, %232 in 1 : vector<16x16xf32>, vector<16x16xf32>, vector<16x8xf32>, vector<16x8xf32>, vector<16x80xf32> -> vector<16x128xf32>
    %c0_94 = arith.constant 0 : index
    %c0_95 = arith.constant 0 : index
    %234 = vector.load %arg20[%c0_94, %c0_95] : memref<16x128xf32, #tpu.memory_space<vmem>>, vector<16x128xf32>
    tpu.vector_store %arg20[%c0_94, %c0_95], %233 {strides = array<i32>} : memref<16x128xf32, #tpu.memory_space<vmem>>, vector<16x128xf32>,
    return
  }
}

</mosaic_0001>

<bundles_post_ra>
// kernel: tde_forward.1
= control target key start
LH: loop header
LB: loop body
LE: loop exit
PB: predicated region body
PF: predicated region fallthrough
CT: control target
= control target key end

     0   :  { %s1412_s0 = inlined_call_operand.vmem [shape: f32[16,16], index: 0, kind: input, shape index: {}]   ;;  %s1413_s1 = inlined_call_operand.vmem [shape: bf16[16,32], index: 1, kind: input, shape index: {}]   ;;  %s1414_s2 = inlined_call_operand.vmem [shape: f32[1,32], index: 2, kind: input, shape index: {}]   ;;  %s1415_s3 = inlined_call_operand.vmem [shape: f32[1,32], index: 3, kind: input, shape index: {}]   ;;  %s1416_s4 = inlined_call_operand.vmem [shape: bf16[32,32], index: 4, kind: input, shape index: {}]   ;;  %s1417_s5 = inlined_call_operand.vmem [shape: f32[1,32], index: 5, kind: input, shape index: {}]   ;;  %s1418_s6 = inlined_call_operand.vmem [shape: f32[1,32], index: 6, kind: input, shape index: {}]   ;;  %s1419_s7 = inlined_call_operand.vmem [shape: bf16[32,8], index: 7, kind: input, shape index: {}]   ;;  %s1420_s8 = inlined_call_operand.vmem [shape: f32[1,8], index: 8, kind: input, shape index: {}]   ;;  %s1421_s9 = inlined_call_operand.vmem [shape: bf16[32,8], index: 9, kind: input, shape index: {}]   ;;  %s1422_s10 = inlined_call_operand.vmem [shape: f32[1,8], index: 10, kind: input, shape index: {}]   ;;  %s1423_s11 = inlined_call_operand.vmem [shape: bf16[8,32], index: 11, kind: input, shape index: {}]   ;;  %s1424_s12 = inlined_call_operand.vmem [shape: bf16[8,32], index: 12, kind: input, shape index: {}]   ;;  %s1425_s13 = inlined_call_operand.vmem [shape: f32[1,32], index: 13, kind: input, shape index: {}]   ;;  %s1426_s14 = inlined_call_operand.vmem [shape: f32[1,32], index: 14, kind: input, shape index: {}]   ;;  %s1427_s15 = inlined_call_operand.vmem [shape: bf16[32,32], index: 15, kind: input, shape index: {}]   ;;  %s1428_s16 = inlined_call_operand.vmem [shape: f32[1,32], index: 16, kind: input, shape index: {}]   ;;  %s1429_s17 = inlined_call_operand.vmem [shape: f32[1,32], index: 17, kind: input, shape index: {}]   ;;  %s1430_s18 = inlined_call_operand.vmem [shape: bf16[32,16], index: 18, kind: input, shape index: {}]   ;;  %s1431_s19 = inlined_call_operand.vmem [shape: f32[1,16], index: 19, kind: input, shape index: {}]   ;;  %s1432_s20 = inlined_call_operand.vmem [shape: f32[16,128], index: 20, kind: output, shape index: {0}]   ;;  %s1433_s21 = inlined_call_operand.vmem [shape: f32[3], index: 21, kind: output, shape index: {1}]  }
   0x1   :  { %1436 = sst [smem:[#allocation5_spill]] %s1412_s0 }
   0x2   :  { %1437 = sst [smem:[#allocation6_spill]] %s1413_s1 }
   0x3   :  { %1438 = sst [smem:[#allocation7_spill]] %s1414_s2 }
   0x4   :  { %1439 = sst [smem:[#allocation8_spill]] %s1415_s3 }
   0x5   :  { %1440 = sst [smem:[#allocation9_spill]] %s1416_s4 }
   0x6   :  { %1441 = sst [smem:[#allocation10_spill]] %s1417_s5 }
   0x7   :  { %1442 = sst [smem:[#allocation11_spill]] %s1428_s16 }
   0x8   :  { %s1443_s26 = sld [smem:[#allocation6_spill]]  ;;  %vm80_vm0 = vcmask 130048  }
   0x9   :  { %s1444_s16 = sld [smem:[#allocation5_spill]] }
   0xe   :  { %v984_v0 = vld [vmem:[%s1443_s26] sm:$0xff] }
   0xf   :  { %v69_v1 = vld [vmem:[%s1444_s16] sm:$0xff]  ;;  %v70_v2 = vld [vmem:[%s1444_s16 + $0x8] sm:$0xff]  ;;  %91 = vmatpush.bf16.msra.mxu0 %v984_v0 }
  0x10   :  { %v71_v3 = vpack.c.bf16 %v70_v2, %v69_v1 }
  0x11   :  { %27 = vsyncpa [#allocation3], 0  ;;  %v1069_v4 = vmov 8.0   ;;  %vm100_vm1 = vcmask 261120   ;;  %s1445_s30 = sld [smem:[#allocation9_spill]]  ;;  %vm366_vm9 = vcmask 1043456  }
  0x12   :  { %934 = vmatmul.msk.bf16.vlgmr.msra.gmra.mxu0 %vm80_vm0, %v71_v3  ;;  %1023 = vrcp.f32 %v1069_v4  ;;  %s1446_s24 = sld [smem:[#allocation7_spill]] }
  0x13   :  { %s1447_s26 = sld [smem:[#allocation8_spill]] }
  0x14   :  { %s1449_s23 = sld [smem:[#allocation11_spill]] }
  0x17   :  { %v986_v43 = vld [vmem:[%s1445_s30 + $0x8] sm:$0xff]  ;;  %v985_v46 = vld [vmem:[%s1445_s30] sm:$0xff] }
  0x18   :  { %v1024_v5 = vpop.eup %1023  ;;  %206 = vmatpush.bf16.msra.mxu1 %v986_v43  ;;  %v1012_v1 = vld [vmem:[%s1446_s24] ss:$0 sm:$0xff]  ;;  %s1070_s24 = smov 16  }
  0x19   :  { %v116_v6 = vmul.f32 8.0, %v1024_v5  ;;  %vm120_vm2 = vweird.f32 %v1024_v5 }
  0x1b   :  { %v117_v7 = vsub.f32 1.0, %v116_v6 }
  0x1c   :  { %207 = vmatpush.bf16.msra.mxu1 %v985_v46 }
  0x1d   :  { %v118_v11 = vmul.f32 %v1024_v5, %v117_v7 }
  0x1f   :  { %v119_v14 = vadd.f32 %v1024_v5, %v118_v11 }
  0x21   :  { %v1198_v20 = vsel %vm120_vm2, %v1024_v5, %v119_v14  ;;  %v1013_v5 = vld [vmem:[%s1447_s26] ss:$0 sm:$0xff]  ;;  %vm362_vm2 = vcmask 64512  }
  0x8f   :  { %v93_v8 = vpop.f32.mrf.mxu0 }
  0x90   :  { %v101_v9 = vsel %vm100_vm1, %v93_v8, 0.0 }
  0x91   :  { %v102_v10 = vrot.slane %v101_v9, 4 }
  0x93   :  { %v103_v12 = vadd.f32 %v102_v10, %v101_v9 }
  0x95   :  { %v104_v13 = vrot.slane %v103_v12, 2 }
  0x97   :  { %v105_v15 = vadd.f32 %v104_v13, %v103_v12  ;;  %v95_v16 = vpop.f32.mrf.mxu0 }
  0x98   :  { %v108_v17 = vsel %vm100_vm1, %v95_v16, 0.0 }
  0x99   :  { %v106_v18 = vrot.slane %v105_v15, 1  ;;  %v109_v19 = vrot.slane %v108_v17, 4 }
  0x9b   :  { %v107_v21 = vadd.f32 %v106_v18, %v105_v15  ;;  %v110_v22 = vadd.f32 %v109_v19, %v108_v17 }
  0x9d   :  { %v122_v23 = vmul.f32 %v1198_v20, %v107_v21  ;;  %v111_v24 = vrot.slane %v110_v22, 2 }
  0x9f   :  { %v124_v25 = vsub.f32 %v93_v8, %v122_v23  ;;  %v112_v26 = vadd.f32 %v111_v24, %v110_v22 }
  0xa1   :  { %v126_v27 = vmul.f32 %v124_v25, %v124_v25  ;;  %v113_v28 = vrot.slane %v112_v26, 1 }
  0xa3   :  { %v128_v29 = vsel %vm100_vm1, %v126_v27, 0.0  ;;  %v114_v30 = vadd.f32 %v113_v28, %v112_v26 }
  0xa4   :  { %v129_v31 = vrot.slane %v128_v29, 4 }
  0xa5   :  { %v123_v32 = vmul.f32 %v1198_v20, %v114_v30 }
  0xa6   :  { %v130_v33 = vadd.f32 %v129_v31, %v128_v29 }
  0xa7   :  { %v125_v34 = vsub.f32 %v95_v16, %v123_v32 }
  0xa8   :  { %v131_v35 = vrot.slane %v130_v33, 2 }
  0xa9   :  { %v127_v36 = vmul.f32 %v125_v34, %v125_v34 }
  0xaa   :  { %v132_v37 = vadd.f32 %v131_v35, %v130_v33 }
  0xab   :  { %v135_v38 = vsel %vm100_vm1, %v127_v36, 0.0 }
  0xac   :  { %v133_v39 = vrot.slane %v132_v37, 1  ;;  %v136_v40 = vrot.slane %v135_v38, 4 }
  0xae   :  { %v134_v41 = vadd.f32 %v133_v39, %v132_v37  ;;  %v137_v42 = vadd.f32 %v136_v40, %v135_v38 }
  0xb0   :  { %v142_v44 = vmul.f32 %v134_v41, %v1198_v20  ;;  %v138_v45 = vrot.slane %v137_v42, 2 }
  0xb2   :  { %v144_v47 = vadd.f32 1e-05, %v142_v44  ;;  %v139_v48 = vadd.f32 %v138_v45, %v137_v42 }
  0xb4   :  { %1025 = vrsqrt.f32 %v144_v47  ;;  %v140_v49 = vrot.slane %v139_v48, 1  ;;  %vm152_vm4 = vweird.f32 %v144_v47 }
  0xb6   :  { %v141_v50 = vadd.f32 %v140_v49, %v139_v48  ;;  %v990_v48 = vld [vmem:[%s1421_s9 + $0x8] sm:$0xff] }
  0xb7   :  { %352 = vmatpush.bf16.msra.mxu3 %v990_v48 }
  0xb8   :  { %v143_v51 = vmul.f32 %v141_v50, %v1198_v20 }
  0xba   :  { %v1026_v52 = vpop.eup %1025  ;;  %v145_v53 = vadd.f32 1e-05, %v143_v51  ;;  %v987_v51 = vld [vmem:[%s1419_s7] sm:$0xff] }
  0xbb   :  { %v147_v54 = vmul.f32 %v1026_v52, %v144_v47  ;;  %vm153_vm3 = vweird.f32 %v1026_v52  ;;  %v988_v47 = vld [vmem:[%s1419_s7 + $0x8] sm:$0xff] }
  0xbc   :  { %1027 = vrsqrt.f32 %v145_v53  ;;  %vm154_vm5 = vmor %vm152_vm4, %vm153_vm3  ;;  %vm162_vm7 = vweird.f32 %v145_v53  ;;  %318 = vmatpush.bf16.msra.mxu2 %v988_v47 }
  0xbd   :  { %v148_v55 = vmul.f32 %v1026_v52, %v147_v54 }
  0xbf   :  { %v149_v56 = vmul.f32 0.5, %v148_v55 }
  0xc0   :  { %319 = vmatpush.bf16.msra.mxu2 %v987_v51 }
  0xc1   :  { %v150_v57 = vsub.f32 1.5, %v149_v56 }
  0xc2   :  { %v1028_v58 = vpop.eup %1027 }
  0xc3   :  { %v151_v59 = vmul.f32 %v1026_v52, %v150_v57  ;;  %v157_v60 = vmul.f32 %v1028_v58, %v145_v53  ;;  %vm163_vm6 = vweird.f32 %v1028_v58 }
  0xc4   :  { %vm164_vm8 = vmor %vm162_vm7, %vm163_vm6 }
  0xc5   :  { %v155_v61 = vsel %vm154_vm5, %v1026_v52, %v151_v59  ;;  %v158_v62 = vmul.f32 %v1028_v58, %v157_v60  ;;  %v989_v52 = vld [vmem:[%s1421_s9] sm:$0xff] }
  0xc6   :  { %v166_v0 = vmul.f32 %v155_v61, %v124_v25  ;;  %353 = vmatpush.bf16.msra.mxu3 %v989_v52  ;;  %v385_v59 = vld [vmem:[%s1424_s12] sm:$0xf]  ;;  %s1448_s12 = sld [smem:[#allocation10_spill]] }
  0xc7   :  { %v159_v63 = vmul.f32 0.5, %v158_v62  ;;  %v390_v61 = vsel %vm366_vm9, %v385_v59, 0 }
  0xc8   :  { %v171_v4 = vmul.f32 %v1012_v1, %v166_v0  ;;  %399 = vmatpush.bf16.msrb.mxu1 %v390_v61 }
  0xc9   :  { %v160_v2 = vsub.f32 1.5, %v159_v63 }
  0xca   :  { %v176_v9 = vadd.f32 %v1013_v5, %v171_v4 }
  0xcb   :  { %v161_v3 = vmul.f32 %v1028_v58, %v160_v2 }
  0xcc   :  { %v178_v11 = vmax.f32 %v176_v9, 0.0 }
  0xcd   :  { %v165_v6 = vsel %vm164_vm8, %v1028_v58, %v161_v3  ;;  %v361_v58 = vld [vmem:[%s1423_s11] sm:$0xf] }
  0xce   :  { %v167_v7 = vmul.f32 %v165_v6, %v125_v34  ;;  %v368_v60 = vsel %vm366_vm9, %v361_v58, 0 }
  0xcf   :  { %377 = vmatpush.bf16.msrb.mxu0 %v368_v60 }
  0xd0   :  { %v172_v8 = vmul.f32 %v1012_v1, %v167_v7 }
  0xd2   :  { %v177_v10 = vadd.f32 %v1013_v5, %v172_v8 }
  0xd4   :  { %v179_v12 = vmax.f32 %v177_v10, 0.0 }
  0xd6   :  { %v180_v13 = vpack.c.bf16 %v179_v12, %v178_v11  ;;  %v1014_v11 = vld [vmem:[%s1448_s12] ss:$0 sm:$0xff] }
  0xd8   :  { %943 = vmatmul.msk.bf16.vlgmr.msra.gmra.mxu1 %vm100_vm1, %v180_v13 }
 0x155   :  { %v209_v14 = vpop.f32.mrf.mxu1 }
 0x156   :  { %v216_v15 = vsel %vm100_vm1, %v209_v14, 0.0 }
 0x157   :  { %v217_v16 = vrot.slane %v216_v15, 4 }
 0x159   :  { %v218_v17 = vadd.f32 %v217_v16, %v216_v15  ;;  %v1015_v15 = vld [vmem:[%s1418_s6] ss:$0 sm:$0xff] }
 0x15b   :  { %v219_v18 = vrot.slane %v218_v17, 2 }
 0x15d   :  { %v220_v19 = vadd.f32 %v219_v18, %v218_v17  ;;  %v211_v21 = vpop.f32.mrf.mxu1 }
 0x15e   :  { %v223_v22 = vsel %vm100_vm1, %v211_v21, 0.0 }
 0x15f   :  { %v221_v23 = vrot.slane %v220_v19, 1  ;;  %v224_v24 = vrot.slane %v223_v22, 4 }
 0x161   :  { %v222_v25 = vadd.f32 %v221_v23, %v220_v19  ;;  %v225_v26 = vadd.f32 %v224_v24, %v223_v22 }
 0x163   :  { %v230_v27 = vmul.f32 %v222_v25, %v1198_v20  ;;  %v226_v28 = vrot.slane %v225_v26, 2 }
 0x165   :  { %v232_v29 = vsub.f32 %v209_v14, %v230_v27  ;;  %v227_v30 = vadd.f32 %v226_v28, %v225_v26  ;;  %v1016_v27 = vld [vmem:[%s1420_s8] ss:$0 sm:$0xff] }
 0x166   :  { %v1017_v28 = vld [vmem:[%s1422_s10] ss:$0 sm:$0xff] }
 0x167   :  { %v234_v31 = vmul.f32 %v232_v29, %v232_v29  ;;  %v228_v32 = vrot.slane %v227_v30, 1 }
 0x169   :  { %v236_v33 = vsel %vm100_vm1, %v234_v31, 0.0  ;;  %v229_v34 = vadd.f32 %v228_v32, %v227_v30 }
 0x16a   :  { %v237_v35 = vrot.slane %v236_v33, 4 }
 0x16b   :  { %v231_v36 = vmul.f32 %v229_v34, %v1198_v20 }
 0x16c   :  { %v238_v37 = vadd.f32 %v237_v35, %v236_v33 }
 0x16d   :  { %v233_v38 = vsub.f32 %v211_v21, %v231_v36 }
 0x16e   :  { %v239_v39 = vrot.slane %v238_v37, 2 }
 0x16f   :  { %v235_v40 = vmul.f32 %v233_v38, %v233_v38 }
 0x170   :  { %v240_v41 = vadd.f32 %v239_v39, %v238_v37 }
 0x171   :  { %v243_v42 = vsel %vm100_vm1, %v235_v40, 0.0 }
 0x172   :  { %v241_v43 = vrot.slane %v240_v41, 1  ;;  %v244_v44 = vrot.slane %v243_v42, 4 }
 0x174   :  { %v242_v45 = vadd.f32 %v241_v43, %v240_v41  ;;  %v245_v46 = vadd.f32 %v244_v44, %v243_v42 }
 0x176   :  { %v250_v49 = vmul.f32 %v242_v45, %v1198_v20  ;;  %v246_v50 = vrot.slane %v245_v46, 2 }
 0x178   :  { %v252_v53 = vadd.f32 1e-05, %v250_v49  ;;  %v247_v54 = vadd.f32 %v246_v50, %v245_v46 }
 0x17a   :  { %1029 = vrsqrt.f32 %v252_v53  ;;  %v248_v55 = vrot.slane %v247_v54, 1  ;;  %vm260_vm11 = vweird.f32 %v252_v53 }
 0x17c   :  { %v249_v56 = vadd.f32 %v248_v55, %v247_v54 }
 0x17e   :  { %v251_v57 = vmul.f32 %v249_v56, %v1198_v20 }
 0x180   :  { %v1030_v62 = vpop.eup %1029  ;;  %v253_v63 = vadd.f32 1e-05, %v251_v57 }
 0x181   :  { %v255_v0 = vmul.f32 %v1030_v62, %v252_v53  ;;  %vm261_vm10 = vweird.f32 %v1030_v62 }
 0x182   :  { %1031 = vrsqrt.f32 %v253_v63  ;;  %vm262_vm12 = vmor %vm260_vm11, %vm261_vm10  ;;  %vm270_vm14 = vweird.f32 %v253_v63 }
 0x183   :  { %v256_v1 = vmul.f32 %v1030_v62, %v255_v0 }
 0x185   :  { %v257_v2 = vmul.f32 0.5, %v256_v1 }
 0x187   :  { %v258_v3 = vsub.f32 1.5, %v257_v2 }
 0x188   :  { %v1032_v4 = vpop.eup %1031 }
 0x189   :  { %v259_v5 = vmul.f32 %v1030_v62, %v258_v3  ;;  %v265_v6 = vmul.f32 %v1032_v4, %v253_v63  ;;  %vm271_vm13 = vweird.f32 %v1032_v4 }
 0x18a   :  { %vm272_vm15 = vmor %vm270_vm14, %vm271_vm13 }
 0x18b   :  { %v263_v7 = vsel %vm262_vm12, %v1030_v62, %v259_v5  ;;  %v266_v8 = vmul.f32 %v1032_v4, %v265_v6 }
 0x18c   :  { %v274_v10 = vmul.f32 %v263_v7, %v232_v29 }
 0x18d   :  { %v267_v9 = vmul.f32 0.5, %v266_v8 }
 0x18e   :  { %v279_v14 = vmul.f32 %v1014_v11, %v274_v10 }
 0x18f   :  { %v268_v12 = vsub.f32 1.5, %v267_v9 }
 0x190   :  { %v284_v19 = vadd.f32 %v1015_v15, %v279_v14 }
 0x191   :  { %v269_v13 = vmul.f32 %v1032_v4, %v268_v12 }
 0x192   :  { %v286_v22 = vmax.f32 %v284_v19, 0.0 }
 0x193   :  { %v273_v16 = vsel %vm272_vm15, %v1032_v4, %v269_v13 }
 0x194   :  { %v275_v17 = vmul.f32 %v273_v16, %v233_v38 }
 0x196   :  { %v280_v18 = vmul.f32 %v1014_v11, %v275_v17 }
 0x198   :  { %v285_v21 = vadd.f32 %v1015_v15, %v280_v18 }
 0x19a   :  { %v287_v23 = vmax.f32 %v285_v21, 0.0 }
 0x19c   :  { %v288_v24 = vpack.c.bf16 %v287_v23, %v286_v22 }
 0x19e   :  { %952 = vmatmul.msk.bf16.vlgmr.msra.gmra.mxu2 %vm100_vm1, %v288_v24  ;;  %961 = vmatmul.msk.bf16.vlgmr.msra.gmra.mxu3 %vm100_vm1, %v288_v24 }
 0x221   :  { %v321_v25 = vpop.f32.mrf.mxu2  ;;  %v355_v26 = vpop.f32.mrf.mxu3 }
 0x222   :  { %v1259_v31 = vadd.f32 %v1016_v27, %v321_v25  ;;  %v1261_v32 = vadd.f32 %v1017_v28, %v355_v26 }
 0x229   :  { %v323_v29 = vpop.f32.mrf.mxu2  ;;  %v357_v30 = vpop.f32.mrf.mxu3 }
 0x22a   :  { %v1263_v33 = vadd.f32 %v1016_v27, %v323_v29  ;;  %v1265_v34 = vadd.f32 %v1017_v28, %v357_v30 }
 0x22c   :  { %v360_v35 = vpack.c.bf16 %v1263_v33, %v1259_v31  ;;  %v384_v36 = vpack.c.bf16 %v1265_v34, %v1261_v32 }
 0x22e   :  { %962 = vmatmul.msk.bf16.vlgmr.msrb.gmra.mxu0 %vm362_vm2, %v360_v35  ;;  %963 = vmatmul.msk.bf16.vlgmr.msrb.gmra.mxu1 %vm362_vm2, %v384_v36 }
 0x2ab   :  { %v379_v37 = vpop.f32.mrf.mxu0  ;;  %v401_v38 = vpop.f32.mrf.mxu1 }
 0x2ac   :  { %v628_v39 = vsel %vm100_vm1, %v379_v37, 0.0  ;;  %v419_v40 = vadd.f32 %v401_v38, %v379_v37 }
 0x2ad   :  { %v629_v41 = vrot.slane %v628_v39, 4 }
 0x2ae   :  { %v421_v42 = vsel %vm100_vm1, %v419_v40, 0.0 }
 0x2af   :  { %v630_v43 = vadd.f32 %v629_v41, %v628_v39  ;;  %v422_v44 = vrot.slane %v421_v42, 4 }
 0x2b1   :  { %v631_v45 = vrot.slane %v630_v43, 2  ;;  %v423_v46 = vadd.f32 %v422_v44, %v421_v42 }
 0x2b3   :  { %v632_v47 = vadd.f32 %v631_v45, %v630_v43  ;;  %v424_v48 = vrot.slane %v423_v46, 2  ;;  %v381_v49 = vpop.f32.mrf.mxu0  ;;  %v403_v50 = vpop.f32.mrf.mxu1 }
 0x2b4   :  { %v635_v51 = vsel %vm100_vm1, %v381_v49, 0.0  ;;  %v420_v52 = vadd.f32 %v403_v50, %v381_v49 }
 0x2b5   :  { %v633_v53 = vrot.slane %v632_v47, 1  ;;  %v425_v54 = vadd.f32 %v424_v48, %v423_v46  ;;  %v636_v55 = vrot.slane %v635_v51, 4  ;;  %v992_v46 = vld [vmem:[%s1427_s15 + $0x8] sm:$0xff] }
 0x2b6   :  { %v428_v56 = vsel %vm100_vm1, %v420_v52, 0.0  ;;  %515 = vmatpush.bf16.msrb.mxu2 %v992_v46  ;;  %704 = vmatpush.bf16.msra.mxu0 %v992_v46 }
 0x2b7   :  { %v634_v57 = vadd.f32 %v633_v53, %v632_v47  ;;  %v426_v58 = vrot.slane %v425_v54, 1  ;;  %v637_v59 = vadd.f32 %v636_v55, %v635_v51  ;;  %v429_v60 = vrot.slane %v428_v56, 4  ;;  %v991_v53 = vld [vmem:[%s1427_s15] sm:$0xff] }
 0x2b9   :  { %v642_v61 = vmul.f32 %v634_v57, %v1198_v20  ;;  %v427_v62 = vadd.f32 %v426_v58, %v425_v54  ;;  %v638_v63 = vrot.slane %v637_v59, 2  ;;  %v430_v0 = vadd.f32 %v429_v60, %v428_v56 }
 0x2ba   :  { %516 = vmatpush.bf16.msrb.mxu2 %v991_v53  ;;  %705 = vmatpush.bf16.msra.mxu0 %v991_v53 }
 0x2bb   :  { %v1276_v1 = vsub.f32 %v379_v37, %v642_v61  ;;  %v435_v2 = vmul.f32 %v427_v62, %v1198_v20  ;;  %v639_v3 = vadd.f32 %v638_v63, %v637_v59  ;;  %v431_v4 = vrot.slane %v430_v0, 2 }
 0x2bd   :  { %v646_v5 = vmul.f32 %v1276_v1, %v1276_v1  ;;  %v1281_v6 = vsub.f32 %v419_v40, %v435_v2  ;;  %v640_v7 = vrot.slane %v639_v3, 1  ;;  %v432_v8 = vadd.f32 %v431_v4, %v430_v0 }
 0x2bf   :  { %v648_v9 = vsel %vm100_vm1, %v646_v5, 0.0  ;;  %v439_v10 = vmul.f32 %v1281_v6, %v1281_v6  ;;  %v641_v11 = vadd.f32 %v640_v7, %v639_v3  ;;  %v433_v12 = vrot.slane %v432_v8, 1 }
 0x2c0   :  { %v649_v13 = vrot.slane %v648_v9, 4 }
 0x2c1   :  { %v441_v14 = vsel %vm100_vm1, %v439_v10, 0.0  ;;  %v643_v15 = vmul.f32 %v641_v11, %v1198_v20  ;;  %v434_v16 = vadd.f32 %v433_v12, %v432_v8 }
 0x2c2   :  { %v650_v17 = vadd.f32 %v649_v13, %v648_v9  ;;  %v442_v18 = vrot.slane %v441_v14, 4 }
 0x2c3   :  { %v1288_v19 = vsub.f32 %v381_v49, %v643_v15  ;;  %v436_v21 = vmul.f32 %v434_v16, %v1198_v20 }
 0x2c4   :  { %v651_v22 = vrot.slane %v650_v17, 2  ;;  %v443_v23 = vadd.f32 %v442_v18, %v441_v14 }
 0x2c5   :  { %v647_v24 = vmul.f32 %v1288_v19, %v1288_v19  ;;  %v1293_v25 = vsub.f32 %v420_v52, %v436_v21  ;;  %v1018_v21 = vld [vmem:[%s1425_s13] ss:$0 sm:$0xff]  ;;  %s918_s13 = sshll.u32 %s1433_s21, 4  ;;  %s919_s13 = int_to_ptr.vmem [resolvable:$true] %s918_s13 }
 0x2c6   :  { %v652_v26 = vadd.f32 %v651_v22, %v650_v17  ;;  %v444_v27 = vrot.slane %v443_v23, 2 }
 0x2c7   :  { %v655_v28 = vsel %vm100_vm1, %v647_v24, 0.0  ;;  %v440_v29 = vmul.f32 %v1293_v25, %v1293_v25 }
 0x2c8   :  { %v653_v30 = vrot.slane %v652_v26, 1  ;;  %v445_v35 = vadd.f32 %v444_v27, %v443_v23  ;;  %v656_v36 = vrot.slane %v655_v28, 4 }
 0x2c9   :  { %v448_v37 = vsel %vm100_vm1, %v440_v29, 0.0 }
 0x2ca   :  { %v654_v38 = vadd.f32 %v653_v30, %v652_v26  ;;  %v446_v39 = vrot.slane %v445_v35, 1  ;;  %v657_v40 = vadd.f32 %v656_v36, %v655_v28  ;;  %v449_v41 = vrot.slane %v448_v37, 4  ;;  %v1019_v30 = vld [vmem:[%s1426_s14] ss:$0 sm:$0xff] }
 0x2cc   :  { %v662_v42 = vmul.f32 %v654_v38, %v1198_v20  ;;  %v447_v43 = vadd.f32 %v446_v39, %v445_v35  ;;  %v658_v44 = vrot.slane %v657_v40, 2  ;;  %v450_v45 = vadd.f32 %v449_v41, %v448_v37 }
 0x2ce   :  { %v664_v47 = vadd.f32 1e-05, %v662_v42  ;;  %v455_v48 = vmul.f32 %v447_v43, %v1198_v20  ;;  %v659_v49 = vadd.f32 %v658_v44, %v657_v40  ;;  %v451_v50 = vrot.slane %v450_v45, 2 }
 0x2d0   :  { %1033 = vrsqrt.f32 %v664_v47  ;;  %v457_v51 = vadd.f32 1e-05, %v455_v48  ;;  %v660_v52 = vrot.slane %v659_v49, 1  ;;  %v452_v54 = vadd.f32 %v451_v50, %v450_v45 }
 0x2d1   :  { %vm672_vm4 = vweird.f32 %v664_v47 }
 0x2d2   :  { %1035 = vrsqrt.f32 %v457_v51  ;;  %v661_v55 = vadd.f32 %v660_v52, %v659_v49  ;;  %v453_v56 = vrot.slane %v452_v54, 1  ;;  %vm465_vm7 = vweird.f32 %v457_v51 }
 0x2d4   :  { %v663_v57 = vmul.f32 %v661_v55, %v1198_v20  ;;  %v454_v58 = vadd.f32 %v453_v56, %v452_v54 }
 0x2d6   :  { %v1034_v59 = vpop.eup %1033  ;;  %v665_v60 = vadd.f32 1e-05, %v663_v57  ;;  %v456_v62 = vmul.f32 %v454_v58, %v1198_v20 }
 0x2d7   :  { %v667_v61 = vmul.f32 %v1034_v59, %v664_v47  ;;  %vm673_vm3 = vweird.f32 %v1034_v59 }
 0x2d8   :  { %v1036_v63 = vpop.eup %1035  ;;  %1037 = vrsqrt.f32 %v665_v60  ;;  %v458_v3 = vadd.f32 1e-05, %v456_v62  ;;  %vm674_vm5 = vmor %vm672_vm4, %vm673_vm3  ;;  %vm682_vm10 = vweird.f32 %v665_v60 }
 0x2d9   :  { %v668_v0 = vmul.f32 %v1034_v59, %v667_v61  ;;  %v460_v2 = vmul.f32 %v1036_v63, %v457_v51  ;;  %vm466_vm6 = vweird.f32 %v1036_v63 }
 0x2da   :  { %1039 = vrsqrt.f32 %v458_v3  ;;  %vm467_vm8 = vmor %vm465_vm7, %vm466_vm6  ;;  %vm475_vm13 = vweird.f32 %v458_v3 }
 0x2db   :  { %v669_v4 = vmul.f32 0.5, %v668_v0  ;;  %v461_v5 = vmul.f32 %v1036_v63, %v460_v2 }
 0x2dd   :  { %v670_v7 = vsub.f32 1.5, %v669_v4  ;;  %v462_v8 = vmul.f32 0.5, %v461_v5 }
 0x2de   :  { %v1038_v9 = vpop.eup %1037 }
 0x2df   :  { %v671_v10 = vmul.f32 %v1034_v59, %v670_v7  ;;  %v463_v11 = vsub.f32 1.5, %v462_v8  ;;  %v677_v12 = vmul.f32 %v1038_v9, %v665_v60  ;;  %vm683_vm9 = vweird.f32 %v1038_v9 }
 0x2e0   :  { %v1040_v13 = vpop.eup %1039  ;;  %vm684_vm11 = vmor %vm682_vm10, %vm683_vm9 }
 0x2e1   :  { %v675_v14 = vsel %vm674_vm5, %v1034_v59, %v671_v10  ;;  %v464_v15 = vmul.f32 %v1036_v63, %v463_v11  ;;  %v678_v16 = vmul.f32 %v1038_v9, %v677_v12  ;;  %v470_v17 = vmul.f32 %v1040_v13, %v458_v3 }
 0x2e2   :  { %v686_v22 = vmul.f32 %v675_v14, %v1276_v1  ;;  %vm476_vm12 = vweird.f32 %v1040_v13 }
 0x2e3   :  { %v679_v18 = vmul.f32 0.5, %v678_v16  ;;  %v468_v23 = vsel %vm467_vm8, %v1036_v63, %v464_v15  ;;  %v471_v24 = vmul.f32 %v1040_v13, %v470_v17  ;;  %vm477_vm14 = vmor %vm475_vm13, %vm476_vm12 }
 0x2e4   :  { %v479_v28 = vmul.f32 %v468_v23, %v1281_v6  ;;  %v688_v35 = vmul.f32 %v1018_v21, %v686_v22 }
 0x2e5   :  { %v680_v26 = vsub.f32 1.5, %v679_v18  ;;  %v472_v27 = vmul.f32 0.5, %v471_v24 }
 0x2e6   :  { %v484_v39 = vmul.f32 %v1018_v21, %v479_v28  ;;  %v690_v40 = vadd.f32 %v1019_v30, %v688_v35 }
 0x2e7   :  { %v681_v29 = vmul.f32 %v1038_v9, %v680_v26  ;;  %v473_v36 = vsub.f32 1.5, %v472_v27 }
 0x2e8   :  { %v489_v44 = vadd.f32 %v1019_v30, %v484_v39  ;;  %v692_v46 = vmax.f32 %v690_v40, 0.0 }
 0x2e9   :  { %v685_v37 = vsel %vm684_vm11, %v1038_v9, %v681_v29  ;;  %v474_v38 = vmul.f32 %v1040_v13, %v473_v36 }
 0x2ea   :  { %v687_v1 = vmul.f32 %v685_v37, %v1288_v19  ;;  %v491_v50 = vmax.f32 %v489_v44, 0.0 }
 0x2eb   :  { %v478_v6 = vsel %vm477_vm14, %v1040_v13, %v474_v38  ;;  %vm903_vm14 = vcmask 326656  }
 0x2ec   :  { %v689_v41 = vmul.f32 %v1018_v21, %v687_v1  ;;  %v480_v42 = vmul.f32 %v478_v6, %v1293_v25 }
 0x2ee   :  { %v691_v43 = vadd.f32 %v1019_v30, %v689_v41  ;;  %v485_v45 = vmul.f32 %v1018_v21, %v480_v42 }
 0x2f0   :  { %v693_v47 = vmax.f32 %v691_v43, 0.0  ;;  %v490_v48 = vadd.f32 %v1019_v30, %v485_v45 }
 0x2f2   :  { %v694_v49 = vpack.c.bf16 %v693_v47, %v692_v46  ;;  %v492_v51 = vmax.f32 %v490_v48, 0.0 }
 0x2f4   :  { %982 = vmatmul.msk.bf16.vlgmr.msra.gmra.mxu0 %vm100_vm1, %v694_v49  ;;  %v493_v19 = vpack.c.bf16 %v492_v51, %v491_v50 }
 0x2f6   :  { %972 = vmatmul.msk.bf16.vlgmr.msrb.gmra.mxu2 %vm100_vm1, %v493_v19  ;;  %v994_v19 = vld [vmem:[%s1430_s18 + $0x8] sm:$0xff] }
 0x2f7   :  { %788 = vmatpush.bf16.msra.mxu1 %v994_v19  ;;  %620 = vmatpush.bf16.msrb.mxu3 %v994_v19 }
 0x371   :  { %v707_v52 = vpop.f32.mrf.mxu0 }
 0x372   :  { %v712_v53 = vsel %vm100_vm1, %v707_v52, 0.0 }
 0x373   :  { %v713_v54 = vrot.slane %v712_v53, 4 }
 0x375   :  { %v714_v55 = vadd.f32 %v713_v54, %v712_v53 }
 0x377   :  { %v715_v25 = vrot.slane %v714_v55, 2 }
 0x379   :  { %v716_v56 = vadd.f32 %v715_v25, %v714_v55  ;;  %v709_v57 = vpop.f32.mrf.mxu0  ;;  %v518_v58 = vpop.f32.mrf.mxu2 }
 0x37a   :  { %v719_v59 = vsel %vm100_vm1, %v709_v57, 0.0  ;;  %v523_v61 = vsel %vm100_vm1, %v518_v58, 0.0 }
 0x37b   :  { %v717_v60 = vrot.slane %v716_v56, 1  ;;  %v720_v62 = vrot.slane %v719_v59, 4  ;;  %v524_v63 = vrot.slane %v523_v61, 4 }
 0x37d   :  { %v718_v0 = vadd.f32 %v717_v60, %v716_v56  ;;  %v721_v2 = vadd.f32 %v720_v62, %v719_v59  ;;  %v525_v3 = vadd.f32 %v524_v63, %v523_v61 }
 0x37f   :  { %v726_v4 = vmul.f32 %v718_v0, %v1198_v20  ;;  %v722_v5 = vrot.slane %v721_v2, 2  ;;  %v526_v7 = vrot.slane %v525_v3, 2 }
 0x381   :  { %v1325_v8 = vsub.f32 %v707_v52, %v726_v4  ;;  %v723_v9 = vadd.f32 %v722_v5, %v721_v2  ;;  %v527_v10 = vadd.f32 %v526_v7, %v525_v3  ;;  %v520_v11 = vpop.f32.mrf.mxu2 }
 0x382   :  { %v530_v14 = vsel %vm100_vm1, %v520_v11, 0.0 }
 0x383   :  { %v730_v12 = vmul.f32 %v1325_v8, %v1325_v8  ;;  %v724_v13 = vrot.slane %v723_v9, 1  ;;  %v528_v15 = vrot.slane %v527_v10, 1  ;;  %v531_v16 = vrot.slane %v530_v14, 4 }
 0x385   :  { %v732_v17 = vsel %vm100_vm1, %v730_v12, 0.0  ;;  %v725_v18 = vadd.f32 %v724_v13, %v723_v9  ;;  %v529_v22 = vadd.f32 %v528_v15, %v527_v10  ;;  %v532_v23 = vadd.f32 %v531_v16, %v530_v14 }
 0x386   :  { %v733_v21 = vrot.slane %v732_v17, 4 }
 0x387   :  { %v727_v24 = vmul.f32 %v725_v18, %v1198_v20  ;;  %v537_v27 = vmul.f32 %v529_v22, %v1198_v20  ;;  %v533_v28 = vrot.slane %v532_v23, 2 }
 0x388   :  { %v734_v26 = vadd.f32 %v733_v21, %v732_v17 }
 0x389   :  { %v1333_v29 = vsub.f32 %v709_v57, %v727_v24  ;;  %v1335_v35 = vsub.f32 %v518_v58, %v537_v27  ;;  %v534_v36 = vadd.f32 %v533_v28, %v532_v23  ;;  %v993_v58 = vld [vmem:[%s1430_s18] sm:$0xff] }
 0x38a   :  { %v735_v30 = vrot.slane %v734_v26, 2  ;;  %789 = vmatpush.bf16.msra.mxu1 %v993_v58  ;;  %621 = vmatpush.bf16.msrb.mxu3 %v993_v58 }
 0x38b   :  { %v731_v37 = vmul.f32 %v1333_v29, %v1333_v29  ;;  %v541_v38 = vmul.f32 %v1335_v35, %v1335_v35  ;;  %v535_v39 = vrot.slane %v534_v36, 1 }
 0x38c   :  { %v736_v1 = vadd.f32 %v735_v30, %v734_v26 }
 0x38d   :  { %v739_v40 = vsel %vm100_vm1, %v731_v37, 0.0  ;;  %v543_v6 = vsel %vm100_vm1, %v541_v38, 0.0  ;;  %v536_v43 = vadd.f32 %v535_v39, %v534_v36  ;;  %v1020_v36 = vld [vmem:[%s1449_s23] ss:$0 sm:$0xff]  ;;  %s1075_s23 = smov [#allocation2]  }
 0x38e   :  { %v737_v41 = vrot.slane %v736_v1, 1  ;;  %v740_v42 = vrot.slane %v739_v40, 4  ;;  %v544_v44 = vrot.slane %v543_v6, 4 }
 0x38f   :  { %v538_v47 = vmul.f32 %v536_v43, %v1198_v20 }
 0x390   :  { %v738_v45 = vadd.f32 %v737_v41, %v736_v1  ;;  %v741_v46 = vadd.f32 %v740_v42, %v739_v40  ;;  %v545_v48 = vadd.f32 %v544_v44, %v543_v6  ;;  %v1021_v41 = vld [vmem:[%s1429_s17] ss:$0 sm:$0xff] }
 0x391   :  { %v1345_v51 = vsub.f32 %v520_v11, %v538_v47 }
 0x392   :  { %v746_v49 = vmul.f32 %v738_v45, %v1198_v20  ;;  %v742_v50 = vrot.slane %v741_v46, 2  ;;  %v546_v52 = vrot.slane %v545_v48, 2 }
 0x393   :  { %v542_v55 = vmul.f32 %v1345_v51, %v1345_v51 }
 0x394   :  { %v748_v53 = vadd.f32 1e-05, %v746_v49  ;;  %v743_v54 = vadd.f32 %v742_v50, %v741_v46  ;;  %v547_v25 = vadd.f32 %v546_v52, %v545_v48 }
 0x395   :  { %v550_v57 = vsel %vm100_vm1, %v542_v55, 0.0 }
 0x396   :  { %1041 = vrsqrt.f32 %v748_v53  ;;  %v744_v56 = vrot.slane %v743_v54, 1  ;;  %v548_v59 = vrot.slane %v547_v25, 1  ;;  %v551_v60 = vrot.slane %v550_v57, 4 }
 0x397   :  { %vm756_vm2 = vweird.f32 %v748_v53 }
 0x398   :  { %v745_v61 = vadd.f32 %v744_v56, %v743_v54  ;;  %v549_v62 = vadd.f32 %v548_v59, %v547_v25  ;;  %v552_v63 = vadd.f32 %v551_v60, %v550_v57 }
 0x39a   :  { %v747_v0 = vmul.f32 %v745_v61, %v1198_v20  ;;  %v557_v2 = vmul.f32 %v549_v62, %v1198_v20  ;;  %v553_v3 = vrot.slane %v552_v63, 2 }
 0x39c   :  { %v1042_v4 = vpop.eup %1041  ;;  %v749_v5 = vadd.f32 1e-05, %v747_v0  ;;  %v559_v9 = vadd.f32 1e-05, %v557_v2  ;;  %v554_v10 = vadd.f32 %v553_v3, %v552_v63  ;;  %v1022_v63 = vld [vmem:[%s1431_s19] ss:$0 sm:$0xff] }
 0x39d   :  { %v751_v7 = vmul.f32 %v1042_v4, %v748_v53  ;;  %vm757_vm15 = vweird.f32 %v1042_v4  ;;  %s1071_s19 = smov 32  }
 0x39e   :  { %1043 = vrsqrt.f32 %v749_v5  ;;  %v555_v12 = vrot.slane %v554_v10, 1  ;;  %vm758_vm3 = vmor %vm756_vm2, %vm757_vm15  ;;  %vm766_vm6 = vweird.f32 %v749_v5  ;;  %vm567_vm7 = vweird.f32 %v559_v9 }
 0x39f   :  { %v752_v11 = vmul.f32 %v1042_v4, %v751_v7  ;;  %1045 = vrsqrt.f32 %v559_v9  ;;  %vm906_vm15 = vcmask 392192  }
 0x3a0   :  { %v556_v14 = vadd.f32 %v555_v12, %v554_v10 }
 0x3a1   :  { %v753_v13 = vmul.f32 0.5, %v752_v11 }
 0x3a2   :  { %v558_v16 = vmul.f32 %v556_v14, %v1198_v20 }
 0x3a3   :  { %v754_v15 = vsub.f32 1.5, %v753_v13 }
 0x3a4   :  { %v1044_v17 = vpop.eup %1043  ;;  %v560_v23 = vadd.f32 1e-05, %v558_v16 }
 0x3a5   :  { %v1046_v18 = vpop.eup %1045  ;;  %v755_v21 = vmul.f32 %v1042_v4, %v754_v15  ;;  %v761_v22 = vmul.f32 %v1044_v17, %v749_v5  ;;  %vm767_vm4 = vweird.f32 %v1044_v17 }
 0x3a6   :  { %v562_v24 = vmul.f32 %v1046_v18, %v559_v9  ;;  %1047 = vrsqrt.f32 %v560_v23  ;;  %vm568_vm5 = vweird.f32 %v1046_v18  ;;  %vm768_vm8 = vmor %vm766_vm6, %vm767_vm4  ;;  %vm577_vm11 = vweird.f32 %v560_v23  ;;  %v1054_v9 = vld [vmem:[%s1444_s16 + $0x8] sm:$0xff] }
 0x3a7   :  { %v759_v26 = vsel %vm758_vm3, %v1042_v4, %v755_v21  ;;  %v762_v27 = vmul.f32 %v1044_v17, %v761_v22  ;;  %vm569_vm9 = vmor %vm567_vm7, %vm568_vm5 }
 0x3a8   :  { %v563_v28 = vmul.f32 %v1046_v18, %v562_v24  ;;  %v770_v37 = vmul.f32 %v759_v26, %v1325_v8 }
 0x3a9   :  { %v763_v30 = vmul.f32 0.5, %v762_v27 }
 0x3aa   :  { %v564_v20 = vmul.f32 0.5, %v563_v28  ;;  %v772_v6 = vmul.f32 %v1020_v36, %v770_v37 }
 0x3ab   :  { %v764_v1 = vsub.f32 1.5, %v763_v30 }
 0x3ac   :  { %v565_v38 = vsub.f32 1.5, %v564_v20  ;;  %v1048_v39 = vpop.eup %1047  ;;  %v774_v47 = vadd.f32 %v1021_v41, %v772_v6 }
 0x3ad   :  { %v765_v40 = vmul.f32 %v1044_v17, %v764_v1  ;;  %v572_v43 = vmul.f32 %v1048_v39, %v560_v23  ;;  %vm578_vm10 = vweird.f32 %v1048_v39 }
 0x3ae   :  { %v566_v42 = vmul.f32 %v1046_v18, %v565_v38  ;;  %v776_v53 = vmax.f32 %v774_v47, 0.0  ;;  %vm579_vm12 = vmor %vm577_vm11, %vm578_vm10 }
 0x3af   :  { %v769_v44 = vsel %vm768_vm8, %v1044_v17, %v765_v40  ;;  %v573_v46 = vmul.f32 %v1048_v39, %v572_v43  ;;  %v1074_v40 = vmov 128.0  }
 0x3b0   :  { %v570_v8 = vsel %vm569_vm9, %v1046_v18, %v566_v42  ;;  %v771_v45 = vmul.f32 %v769_v44, %v1333_v29 }
 0x3b1   :  { %v574_v49 = vmul.f32 0.5, %v573_v46  ;;  %v581_v50 = vmul.f32 %v570_v8, %v1335_v35 }
 0x3b2   :  { %v773_v48 = vmul.f32 %v1020_v36, %v771_v45 }
 0x3b3   :  { %v575_v52 = vsub.f32 1.5, %v574_v49  ;;  %v586_v25 = vmul.f32 %v1020_v36, %v581_v50 }
 0x3b4   :  { %v775_v19 = vadd.f32 %v1021_v41, %v773_v48 }
 0x3b5   :  { %v576_v55 = vmul.f32 %v1048_v39, %v575_v52  ;;  %v591_v29 = vadd.f32 %v1021_v41, %v586_v25 }
 0x3b6   :  { %v777_v54 = vmax.f32 %v775_v19, 0.0 }
 0x3b7   :  { %v580_v57 = vsel %vm579_vm12, %v1048_v39, %v576_v55  ;;  %v593_v61 = vmax.f32 %v591_v29, 0.0 }
 0x3b8   :  { %v778_v56 = vpack.c.bf16 %v777_v54, %v776_v53  ;;  %v582_v58 = vmul.f32 %v580_v57, %v1345_v51  ;;  %v1053_v51 = vld [vmem:[%s1444_s16] sm:$0xff]  ;;  %s1072_s16 = smov 40  }
 0x3ba   :  { %983 = vmatmul.msk.bf16.vlgmr.msra.gmra.mxu1 %vm100_vm1, %v778_v56  ;;  %v587_v59 = vmul.f32 %v1020_v36, %v582_v58 }
 0x3bc   :  { %v592_v60 = vadd.f32 %v1021_v41, %v587_v59 }
 0x3be   :  { %v594_v35 = vmax.f32 %v592_v60, 0.0 }
 0x3c0   :  { %v595_v62 = vpack.c.bf16 %v594_v35, %v593_v61 }
 0x3c2   :  { %981 = vmatmul.msk.bf16.vlgmr.msrb.gmra.mxu3 %vm100_vm1, %v595_v62 }
 0x437   :  { %v791_v0 = vpop.f32.mrf.mxu1 }
 0x438   :  { %v792_v2 = vadd.f32 %v1022_v63, %v791_v0 }
 0x43a   :  { %v796_v3 = vsub.f32 %v792_v2, %v1053_v51 }
 0x43c   :  { %v801_v11 = vmul.f32 %v796_v3, %v796_v3 }
 0x43e   :  { %v803_v16 = vsel %vm80_vm0, %v801_v11, 0.0 }
 0x43f   :  { %v793_v4 = vpop.f32.mrf.mxu1 }
 0x440   :  { %v794_v5 = vadd.f32 %v1022_v63, %v793_v4 }
 0x442   :  { %879 = vrot.lane.b32.xlu2 %v794_v5, %s1070_s24  ;;  %v800_v7 = vsub.f32 %v792_v2, %v794_v5  ;;  %v797_v10 = vsub.f32 %v794_v5, %v1054_v9 }
 0x444   :  { %v853_v12 = vmul.f32 %v800_v7, %v800_v7  ;;  %v802_v13 = vmul.f32 %v797_v10, %v797_v10 }
 0x445   :  { %v623_v14 = vpop.f32.mrf.mxu3 }
 0x446   :  { %v854_v15 = vsel %vm80_vm0, %v853_v12, 0.0  ;;  %v804_v17 = vsel %vm80_vm0, %v802_v13, 0.0  ;;  %v624_v21 = vadd.f32 %v1022_v63, %v623_v14 }
 0x447   :  { %855 = vadd.xlane.f32.xlu1 %v854_v15  ;;  %v805_v18 = vadd.f32 %v804_v17, %v803_v16 }
 0x448   :  { %v798_v22 = vsub.f32 %v624_v21, %v1053_v51 }
 0x449   :  { %806 = vadd.xlane.f32.xlu0 %v805_v18 }
 0x44a   :  { %885 = vrot.lane.b32.xlu2 %v1259_v31, %s1071_s19  ;;  %v827_v26 = vmul.f32 %v798_v22, %v798_v22  ;;  %v1073_v31 = vmov 256.0  }
 0x44b   :  { %1049 = vrcp.f32 %v1073_v31 }
 0x44c   :  { %v829_v30 = vsel %vm80_vm0, %v827_v26, 0.0  ;;  %1051 = vrcp.f32 %v1074_v40 }
 0x44d   :  { %v625_v23 = vpop.f32.mrf.mxu3 }
 0x44e   :  { %v1385_v24 = vadd.f32 %v1022_v63, %v625_v23 }
 0x450   :  { %v799_v27 = vsub.f32 %v1385_v24, %v1054_v9 }
 0x451   :  { %v1050_v20 = vpop.eup %1049 }
 0x452   :  { %893 = vrot.lane.b32.xlu2 %v1261_v32, %s1072_s16  ;;  %v828_v28 = vmul.f32 %v799_v27, %v799_v27  ;;  %v816_v1 = vmul.f32 256.0, %v1050_v20  ;;  %v1052_v46 = vpop.eup %1051  ;;  %vm820_vm13 = vweird.f32 %v1050_v20 }
 0x453   :  { %v865_v50 = vmul.f32 128.0, %v1052_v46  ;;  %vm869_vm2 = vweird.f32 %v1052_v46 }
 0x454   :  { %v830_v36 = vsel %vm80_vm0, %v828_v28, 0.0  ;;  %v817_v38 = vsub.f32 1.0, %v816_v1 }
 0x455   :  { %v831_v37 = vadd.f32 %v830_v36, %v829_v30  ;;  %v866_v54 = vsub.f32 1.0, %v865_v50 }
 0x456   :  { %v818_v6 = vmul.f32 %v1050_v20, %v817_v38 }
 0x457   :  { %832 = vadd.xlane.f32.xlu0 %v831_v37  ;;  %v867_v57 = vmul.f32 %v1052_v46, %v866_v54 }
 0x458   :  { %v819_v45 = vadd.f32 %v1050_v20, %v818_v6 }
 0x459   :  { %v868_v35 = vadd.f32 %v1052_v46, %v867_v57 }
 0x45a   :  { %895 = vrot.lane.b32.xlu2 %v1265_v34, %s1072_s16  ;;  %v821_v49 = vsel %vm820_vm13, %v1050_v20, %v819_v45 }
 0x45b   :  { %v870_v5 = vsel %vm869_vm2, %v1052_v46, %v868_v35 }
 0x460   :  { %877 = vrot.lane.b32.xlu1 %v792_v2, %s1070_s24 }
 0x46b   :  { %887 = vrot.lane.b32.xlu0 %v1263_v33, %s1071_s19 }
 0x49c   :  { %v880_v42 = vpop.permute.xlu2 %879 }
 0x49d   :  { %v900_v7 = vsel %vm80_vm0, %v1385_v24, %v880_v42 }
 0x4a4   :  { %v886_v19 = vpop.permute.xlu2 %885 }
 0x4ac   :  { %v894_v62 = vpop.permute.xlu2 %893 }
 0x4b4   :  { %v896_v10 = vpop.permute.xlu2 %895 }
 0x4ba   :  { %v856_v43 = vpop.xlane.xlu1 %855 }
 0x4bb   :  { %v857_v8 = vrot.slane %v856_v43, 4 }
 0x4bc   :  { %v807_v39 = vpop.xlane.xlu0 %806 }
 0x4bd   :  { %v808_v32 = vrot.slane %v807_v39, 4  ;;  %v858_v47 = vadd.f32 %v857_v8, %v856_v43 }
 0x4bf   :  { %v809_v41 = vadd.f32 %v808_v32, %v807_v39  ;;  %v859_v52 = vrot.slane %v858_v47, 2 }
 0x4c1   :  { %v810_v44 = vrot.slane %v809_v41, 2  ;;  %v860_v56 = vadd.f32 %v859_v52, %v858_v47 }
 0x4c3   :  { %v811_v34 = vadd.f32 %v810_v44, %v809_v41  ;;  %v861_v61 = vrot.slane %v860_v56, 1 }
 0x4c5   :  { %v812_v33 = vrot.slane %v811_v34, 1  ;;  %v862_v4 = vadd.f32 %v861_v61, %v860_v56 }
 0x4c7   :  { %v813_v48 = vadd.f32 %v812_v33, %v811_v34 }
 0x4c9   :  { %995 = vpush %v813_v48 }
 0x4ca   :  { %997 = vpush %v821_v49  ;;  %v833_v53 = vpop.xlane.xlu0 %832 }
 0x4cb   :  { %v834_v55 = vrot.slane %v833_v53, 4 }
 0x4cd   :  { %v835_v25 = vadd.f32 %v834_v55, %v833_v53 }
 0x4cf   :  { %v836_v58 = vrot.slane %v835_v25, 2 }
 0x4d1   :  { %v837_v59 = vadd.f32 %v836_v58, %v835_v25 }
 0x4d2   :  { %v878_v29 = vpop.permute.xlu1 %877 }
 0x4d3   :  { %v899_v60 = vsel %vm80_vm0, %v624_v21, %v878_v29  ;;  %v838_v0 = vrot.slane %v837_v59, 1 }
 0x4d4   :  { %v901_v63 = vsel %vm100_vm1, %v899_v60, %v886_v19 }
 0x4d5   :  { %v904_v2 = vsel %vm903_vm14, %v901_v63, %v894_v62  ;;  %v839_v51 = vadd.f32 %v838_v0, %v837_v59 }
 0x4d6   :  { %v907_v3 = vsel %vm906_vm15, %v904_v2, 0.0 }
 0x4d7   :  { %909 = vst [vmem:[%s1432_s20] sm:$0xff] %v907_v3 }
 0x4d8   :  { %999 = vpush %v839_v51 }
 0x4d9   :  { %1001 = vpush %v862_v4 }
 0x4da   :  { %1003 = vpush %v870_v5 }
 0x4dd   :  { %v888_v9 = vpop.permute.xlu0 %887 }
 0x4de   :  { %v902_v11 = vsel %vm100_vm1, %v900_v7, %v888_v9 }
 0x4df   :  { %v905_v12 = vsel %vm903_vm14, %v902_v11, %v896_v10 }
 0x4e0   :  { %v908_v13 = vsel %vm906_vm15, %v905_v12, 0.0 }
 0x4e1   :  { %910 = vst [vmem:[%s1432_s20 + $0x8] sm:$0xff] %v908_v13 }
 0x4fa   :  { %s996_s10 = spop %995 }
 0x4fb   :  { %s998_s3 = spop %997 }
 0x4fc   :  { %s823_s28 = smul.f32 %s998_s3, %s996_s10 }
 0x4fe   :  { %s824_s15 = smul.f32 2.0, %s823_s28 }
 0x500   :  { %826 = sst [smem:[#allocation2]] %s824_s15 }
 0x509   :  { %s1000_s29 = spop %999 }
 0x50a   :  { %s849_s14 = smul.f32 %s1000_s29, %s998_s3  ;;  %s1002_s30 = spop %1001 }
 0x50b   :  { %s1004_s5 = spop %1003 }
 0x50c   :  { %s850_s18 = smul.f32 2.0, %s849_s14 }
 0x50d   :  { %s872_s22 = smul.f32 %s1004_s5, %s1002_s30 }
 0x50e   :  { %852 = sst [smem:[#allocation2 + $0x1]] %s850_s18 }
 0x50f   :  { %874 = sst [smem:[#allocation2 + $0x2]] %s872_s22 }
 0x510   :  { %921 = dma.smem_to_vmem %s1075_s23, 16, %s919_s13, [#allocation3]  }
 0x511   :  { %1067 = dma.done.wait [#allocation3], 16  }
 0x512   :  { %1068 = vsyncadd [#allocation3], 4294967280 }
 0x513   :  { %928 = sfence }
 0x514   :  { %929 = vsyncpa [#allocation3], 1 }

</bundles_post_ra>
